<compile_context>
chip_gen: v6e
topology: v6e:2x2x1
jax: 0.10.0
libtpu: 0.0.40
codegen_flags: <defaults>
</compile_context>

<pallas_src>
import jax
import jax.numpy as jnp
from jax.experimental import pallas as pl
from jax.experimental.pallas import tpu as pltpu


# --------------------------------------------------------------------------- kernel

def _group_gru_kernel(x_ref, h_ref, wx_ref, wh_ref, out_ref):
    # x_ref:  (B, Gb, I)    wx_ref: (Gb, I, 3H)   gate order [r | i | n] (PyTorch chunk)
    # h_ref:  (B, Gb, H)    wh_ref: (Gb, H, 3H)
    # out_ref:(B, Gb, H)
    H = out_ref.shape[-1]
    mm_dtype = wx_ref.dtype

    x = x_ref[...]
    h = h_ref[...]                          # single load; reused for matmul + blend
    h_f32 = h.astype(jnp.float32)

    x_mm = x if x.dtype == mm_dtype else x.astype(mm_dtype)
    h_mm = h if h.dtype == mm_dtype else h.astype(mm_dtype)

    # One fused (B,K)@(K,3H) matmul per group for each of x2h / h2h: 2 MXU weight
    # sequences per group instead of 6.  Accumulation in f32 on the MXU.
    gate_x = jnp.einsum("bgk,gkh->bgh", x_mm, wx_ref[...],
                        preferred_element_type=jnp.float32)      # (B, Gb, 3H)
    gate_h = jnp.einsum("bgk,gkh->bgh", h_mm, wh_ref[...],
                        preferred_element_type=jnp.float32)      # (B, Gb, 3H)

    # r and i gates share one sigmoid over a 2H-wide slab (denser EUP vregs).
    ri = jax.nn.sigmoid(gate_x[..., :2 * H] + gate_h[..., :2 * H])
    resetgate = ri[..., :H]
    inputgate = ri[..., H:]
    newgate = jnp.tanh(gate_x[..., 2 * H:] + resetgate * gate_h[..., 2 * H:])
    hy = newgate + inputgate * (h_f32 - newgate)

    out_ref[...] = hy.astype(out_ref.dtype)


# ------------------------------------------------------------------ block-size logic

def _round_up(v, m):
    return -(-v // m) * m


def _padded_tile_bytes(shape, itemsize):
    """VMEM bytes of one tile: last dim padded to 128 lanes, 2nd-last padded to the
    sublane multiple (8 for f32, 16 for bf16, 32 for int8); leading dims multiply."""
    sub_mult = max(8, 32 // itemsize)
    lead = 1
    for d in shape[:-2]:
        lead *= int(d)
    s = _round_up(int(shape[-2]), sub_mult)
    l = _round_up(int(shape[-1]), 128)
    return lead * s * l * itemsize


def _step_vmem_bytes(Gb, B, I, H, act_isize, w_isize, out_isize):
    tiles = (_padded_tile_bytes((B, Gb, I), act_isize)          # x block
             + _padded_tile_bytes((B, Gb, H), act_isize)        # hidden block
             + _padded_tile_bytes((Gb, I, 3 * H), w_isize)      # x2h weights
             + _padded_tile_bytes((Gb, H, 3 * H), w_isize)      # h2h weights
             + _padded_tile_bytes((B, Gb, H), out_isize))       # output block
    pipelined = 2 * tiles                                       # BlockSpec double-buffers
    intermediates = 3 * _padded_tile_bytes((B, Gb, 3 * H), 4)   # gate_x/gate_h/temps, f32
    return pipelined + intermediates


def _choose_group_block(G, B, I, H, act_isize, w_isize, out_isize, budget_bytes):
    # (B, Gb, *) blocks put Gb on the sublane axis, so Gb must be a multiple of 8
    # or the full group count (the (8,128) BlockSpec constraint).
    candidates = [d for d in range(1, G + 1)
                  if G % d == 0 and (d == G or d % 8 == 0)]
    feasible = [d for d in candidates
                if _step_vmem_bytes(d, B, I, H, act_isize, w_isize, out_isize)
                <= budget_bytes]
    if not feasible:
        return min(candidates)

    def steps(d):
        return G // d

    for pred in (lambda d: steps(d) >= 4 and steps(d) % 2 == 0,   # >=2 steps/core on v7x
                 lambda d: steps(d) >= 2):                        # some DMA/compute overlap
        tier = [d for d in feasible if pred(d)]
        if tier:
            return max(tier)
    return max(feasible)


def _vmem_budget_and_limit():
    cap = 64 * 1024 * 1024            # conservative default: v7x has 64 MiB / TensorCore
    try:
        info = pltpu.get_tpu_info()
        cap = int(getattr(info, "vmem_capacity_bytes", cap) or cap)
    except Exception:
        pass
    if cap <= 64 * 1024 * 1024:       # v7x-class: stay well clear of physical VMEM
        budget = int(0.40 * cap)
    else:                             # v5e / v6e (128 MiB physical): use the headroom
        budget = int(0.60 * cap)
    limit = int(0.82 * cap)
    return budget, limit


# ----------------------------------------------------------------------------- wrapper

def group_gru_cell(x, hidden, wx, wh, *, donate_hidden=False,
                   vmem_budget_bytes=None, vmem_limit_bytes=None):
    """x: (B, G, I), hidden: (B, G, H), wx: (G, I, 3H), wh: (G, H, 3H).
    Returns the new hidden (B, G, H), matching GroupGRUCell.forward.

    Weights are consumed exactly as the module stores them (no per-call repack or
    cast).  For bf16 MXU operands pass bf16 wx/wh (cast once, outside any scan)."""
    B, G, I = x.shape
    H = hidden.shape[-1]
    assert hidden.shape == (B, G, H)
    assert wx.shape == (G, I, 3 * H) and wh.shape == (G, H, 3 * H)

    budget_default, limit_default = _vmem_budget_and_limit()
    budget = vmem_budget_bytes or budget_default
    limit = vmem_limit_bytes or limit_default

    act_isize = jnp.dtype(x.dtype).itemsize
    w_isize = jnp.dtype(wx.dtype).itemsize
    out_isize = jnp.dtype(hidden.dtype).itemsize
    Gb = _choose_group_block(G, B, I, H, act_isize, w_isize, out_isize, budget)
    grid = (G // Gb,)

    # Aliasing hidden -> output drops one HBM write stream when the caller is going
    # to overwrite the old hidden anyway (e.g. inside a time-step scan).
    io_aliases = {1: 0} if donate_hidden else {}

    return pl.pallas_call(
        _group_gru_kernel,
        out_shape=jax.ShapeDtypeStruct((B, G, H), hidden.dtype),
        grid_spec=pltpu.PrefetchScalarGridSpec(
            num_scalar_prefetch=0,
            grid=grid,
            in_specs=[
                pl.BlockSpec((B, Gb, I), lambda g: (0, g, 0)),
                pl.BlockSpec((B, Gb, H), lambda g: (0, g, 0)),
                pl.BlockSpec((Gb, I, 3 * H), lambda g: (g, 0, 0)),
                pl.BlockSpec((Gb, H, 3 * H), lambda g: (g, 0, 0)),
            ],
            out_specs=pl.BlockSpec((B, Gb, H), lambda g: (0, g, 0)),
        ),
        input_output_aliases=io_aliases,
        compiler_params=pltpu.CompilerParams(
            dimension_semantics=("parallel",),
            vmem_limit_bytes=limit,
        ),
    )(x, hidden, wx, wh)


def group_gru_cell_ref(x, hidden, wx, wh):
    """Pure-JAX reference mirroring the PyTorch forward exactly."""
    gate_x = jnp.einsum("bgi,gio->bgo", x, wx, preferred_element_type=jnp.float32)
    gate_h = jnp.einsum("bgh,gho->bgo", hidden, wh, preferred_element_type=jnp.float32)
    H = hidden.shape[-1]
    i_r, i_i, i_n = gate_x[..., :H], gate_x[..., H:2 * H], gate_x[..., 2 * H:]
    h_r, h_i, h_n = gate_h[..., :H], gate_h[..., H:2 * H], gate_h[..., 2 * H:]
    resetgate = jax.nn.sigmoid(i_r + h_r)
    inputgate = jax.nn.sigmoid(i_i + h_i)
    newgate = jnp.tanh(i_n + resetgate * h_n)
    hidden_f32 = hidden.astype(jnp.float32)
    return (newgate + inputgate * (hidden_f32 - newgate)).astype(hidden.dtype)


if __name__ == "__main__":
    # Config 1: matches the PyTorch module after reset_parameters() (all-ones
    # weights).  batch=2, num_grus=4, input_size=16, hidden_size=32.
    B, G, I, H = 2, 4, 16, 32
    kx, kh = jax.random.split(jax.random.PRNGKey(0))
    x = jax.random.normal(kx, (B, G, I), dtype=jnp.float32)
    hidden = jax.random.normal(kh, (B, G, H), dtype=jnp.float32)
    wx = jnp.ones((G, I, 3 * H), dtype=jnp.float32)
    wh = jnp.ones((G, H, 3 * H), dtype=jnp.float32)

    out = jax.block_until_ready(group_gru_cell(x, hidden, wx, wh))
    ref = group_gru_cell_ref(x, hidden, wx, wh)
    assert out.shape == (B, G, H)
    assert jnp.allclose(out, ref, atol=1e-4, rtol=1e-4), "ones-weight mismatch"

    # Config 2: randomized GroupLinearLayer-style weights (0.01 * randn), G=16 so
    # the group-block picker produces a multi-step grid (Gb=8, 2 steps) and
    # exercises the blocked index maps + DMA pipelining.
    B2, G2, I2, H2 = 2, 16, 16, 32
    k1, k2, k3, k4 = jax.random.split(jax.random.PRNGKey(1), 4)
    x2 = jax.random.normal(k1, (B2, G2, I2), dtype=jnp.float32)
    h2 = jax.random.normal(k2, (B2, G2, H2), dtype=jnp.float32)
    wx2 = 0.01 * jax.random.normal(k3, (G2, I2, 3 * H2), dtype=jnp.float32)
    wh2 = 0.01 * jax.random.normal(k4, (G2, H2, 3 * H2), dtype=jnp.float32)

    out2 = jax.block_until_ready(group_gru_cell(x2, h2, wx2, wh2))
    ref2 = group_gru_cell_ref(x2, h2, wx2, wh2)
    assert jnp.allclose(out2, ref2, atol=1e-4, rtol=1e-4), "random-weight mismatch"

    # Config 3: group count (6) that is not a multiple of 8 -> falls back to a
    # single full-G block (the (8,128) sublane rule on the block's 2nd-last dim).
    B3, G3, I3, H3 = 2, 6, 16, 32
    k5, k6, k7, k8 = jax.random.split(jax.random.PRNGKey(2), 4)
    x3 = jax.random.normal(k5, (B3, G3, I3), dtype=jnp.float32)
    h3 = jax.random.normal(k6, (B3, G3, H3), dtype=jnp.float32)
    wx3 = 0.01 * jax.random.normal(k7, (G3, I3, 3 * H3), dtype=jnp.float32)
    wh3 = 0.01 * jax.random.normal(k8, (G3, H3, 3 * H3), dtype=jnp.float32)

    out3 = jax.block_until_ready(group_gru_cell(x3, h3, wx3, wh3))
    ref3 = group_gru_cell_ref(x3, h3, wx3, wh3)
    assert jnp.allclose(out3, ref3, atol=1e-4, rtol=1e-4), "odd-group-count mismatch"

    print("KERNEL_OK")
</pallas_src>

<mosaic_0001>
module attributes {stable_mosaic.version = 11 : i64} {
  func.func @_group_gru_kernel(%arg0: i32, %arg1: memref<2x4x16xf32, #tpu.memory_space<vmem>>, %arg2: memref<2x4x32xf32, #tpu.memory_space<vmem>>, %arg3: memref<4x16x96xf32, #tpu.memory_space<vmem>>, %arg4: memref<4x32x96xf32, #tpu.memory_space<vmem>>, %arg5: memref<2x4x32xf32, #tpu.memory_space<vmem>>) attributes {dimension_semantics = [#tpu.dimension_semantics<parallel>], iteration_bounds = array<i64: 1>, scalar_prefetch = 0 : i64, scratch_operands = 0 : i64, tpu.core_type = #tpu.core_type<tc>, window_params = [{transform_indices = @transform_0, window_bounds = array<i64: 2, 4, 16>}, {transform_indices = @transform_1, window_bounds = array<i64: 2, 4, 32>}, {transform_indices = @transform_2, window_bounds = array<i64: 4, 16, 96>}, {transform_indices = @transform_3, window_bounds = array<i64: 4, 32, 96>}, {transform_indices = @transform_4, window_bounds = array<i64: 2, 4, 32>}]} {
    %c0 = arith.constant 0 : index
    %c0_0 = arith.constant 0 : index
    %c0_1 = arith.constant 0 : index
    %0 = vector.load %arg1[%c0, %c0_0, %c0_1] : memref<2x4x16xf32, #tpu.memory_space<vmem>>, vector<2x4x16xf32>
    %c0_2 = arith.constant 0 : index
    %c0_3 = arith.constant 0 : index
    %c0_4 = arith.constant 0 : index
    %1 = vector.load %arg2[%c0_2, %c0_3, %c0_4] : memref<2x4x32xf32, #tpu.memory_space<vmem>>, vector<2x4x32xf32>
    %c0_5 = arith.constant 0 : index
    %c0_6 = arith.constant 0 : index
    %c0_7 = arith.constant 0 : index
    %2 = vector.load %arg3[%c0_5, %c0_6, %c0_7] : memref<4x16x96xf32, #tpu.memory_space<vmem>>, vector<4x16x96xf32>
    "tpu.trace_start"() <{level = 10 : i32, message = "bgk,gkh->bgh"}> : () -> ()
    %cst = arith.constant dense<0.000000e+00> : vector<4x96x2xf32>
    %3 = tpu.matmul %2, %0, %cst {dimension_numbers = #tpu.dot_dimension_numbers<[1], [2], [2], [0], [0, 0, 0, 2, 1, 0], [0], [1]>} : vector<4x16x96xf32>, vector<2x4x16xf32>, vector<4x96x2xf32> -> vector<4x96x2xf32>
    %4 = tpu.transpose %3, [2, 0, 1] : vector<4x96x2xf32> -> vector<2x4x96xf32>
    "tpu.trace_stop"() : () -> ()
    %c0_8 = arith.constant 0 : index
    %c0_9 = arith.constant 0 : index
    %c0_10 = arith.constant 0 : index
    %5 = vector.load %arg4[%c0_8, %c0_9, %c0_10] : memref<4x32x96xf32, #tpu.memory_space<vmem>>, vector<4x32x96xf32>
    "tpu.trace_start"() <{level = 10 : i32, message = "bgk,gkh->bgh"}> : () -> ()
    %cst_11 = arith.constant dense<0.000000e+00> : vector<4x96x2xf32>
    %6 = tpu.matmul %5, %1, %cst_11 {dimension_numbers = #tpu.dot_dimension_numbers<[1], [2], [2], [0], [0, 0, 0, 2, 1, 0], [0], [1]>} : vector<4x32x96xf32>, vector<2x4x32xf32>, vector<4x96x2xf32> -> vector<4x96x2xf32>
    %7 = tpu.transpose %6, [2, 0, 1] : vector<4x96x2xf32> -> vector<2x4x96xf32>
    "tpu.trace_stop"() : () -> ()
    %8 = vector.extract_strided_slice %4 {offsets = [0, 0, 0], sizes = [2, 4, 64], strides = [1, 1, 1]} : vector<2x4x96xf32> to vector<2x4x64xf32>
    %9 = vector.extract_strided_slice %7 {offsets = [0, 0, 0], sizes = [2, 4, 64], strides = [1, 1, 1]} : vector<2x4x96xf32> to vector<2x4x64xf32>
    %10 = arith.addf %8, %9 : vector<2x4x64xf32>
    %11 = arith.negf %10 : vector<2x4x64xf32>
    %12 = math.exp %11 : vector<2x4x64xf32>
    %cst_12 = arith.constant 1.000000e+00 : f32
    %13 = vector.broadcast %cst_12 : f32 to vector<2x4x64xf32>
    %14 = arith.addf %13, %12 : vector<2x4x64xf32>
    %15 = arith.divf %13, %14 : vector<2x4x64xf32>
    %16 = vector.extract_strided_slice %15 {offsets = [0, 0, 0], sizes = [2, 4, 32], strides = [1, 1, 1]} : vector<2x4x64xf32> to vector<2x4x32xf32>
    %17 = vector.extract_strided_slice %15 {offsets = [0, 0, 32], sizes = [2, 4, 32], strides = [1, 1, 1]} : vector<2x4x64xf32> to vector<2x4x32xf32>
    %18 = vector.extract_strided_slice %4 {offsets = [0, 0, 64], sizes = [2, 4, 32], strides = [1, 1, 1]} : vector<2x4x96xf32> to vector<2x4x32xf32>
    %19 = vector.extract_strided_slice %7 {offsets = [0, 0, 64], sizes = [2, 4, 32], strides = [1, 1, 1]} : vector<2x4x96xf32> to vector<2x4x32xf32>
    %20 = arith.mulf %16, %19 : vector<2x4x32xf32>
    %21 = arith.addf %18, %20 : vector<2x4x32xf32>
    %22 = math.tanh %21 : vector<2x4x32xf32>
    %23 = arith.subf %1, %22 : vector<2x4x32xf32>
    %24 = arith.mulf %17, %23 : vector<2x4x32xf32>
    %25 = arith.addf %22, %24 : vector<2x4x32xf32>
    %c0_13 = arith.constant 0 : index
    %c0_14 = arith.constant 0 : index
    %c0_15 = arith.constant 0 : index
    %26 = vector.load %arg5[%c0_13, %c0_14, %c0_15] : memref<2x4x32xf32, #tpu.memory_space<vmem>>, vector<2x4x32xf32>
    tpu.vector_store %arg5[%c0_13, %c0_14, %c0_15], %25 {strides = array<i32>} : memref<2x4x32xf32, #tpu.memory_space<vmem>>, vector<2x4x32xf32>,
    return
  }
  func.func @transform_0(%arg0: i32) -> (i32, i32, i32) {
    %c0_i32 = arith.constant 0 : i32
    %c0_i32_0 = arith.constant 0 : i32
    %c0_i32_1 = arith.constant 0 : i32
    return %c0_i32, %arg0, %c0_i32_0 : i32, i32, i32
  }
  func.func @transform_1(%arg0: i32) -> (i32, i32, i32) {
    %c0_i32 = arith.constant 0 : i32
    %c0_i32_0 = arith.constant 0 : i32
    %c0_i32_1 = arith.constant 0 : i32
    return %c0_i32, %arg0, %c0_i32_0 : i32, i32, i32
  }
  func.func @transform_2(%arg0: i32) -> (i32, i32, i32) {
    %c0_i32 = arith.constant 0 : i32
    %c0_i32_0 = arith.constant 0 : i32
    %c0_i32_1 = arith.constant 0 : i32
    return %arg0, %c0_i32, %c0_i32_0 : i32, i32, i32
  }
  func.func @transform_3(%arg0: i32) -> (i32, i32, i32) {
    %c0_i32 = arith.constant 0 : i32
    %c0_i32_0 = arith.constant 0 : i32
    %c0_i32_1 = arith.constant 0 : i32
    return %arg0, %c0_i32, %c0_i32_0 : i32, i32, i32
  }
  func.func @transform_4(%arg0: i32) -> (i32, i32, i32) {
    %c0_i32 = arith.constant 0 : i32
    %c0_i32_0 = arith.constant 0 : i32
    %c0_i32_1 = arith.constant 0 : i32
    return %c0_i32, %arg0, %c0_i32_0 : i32, i32, i32
  }
}

</mosaic_0001>

<bundles_post_ra>
// kernel: tpu_custom_call.1
= control target key start
LH: loop header
LB: loop body
LE: loop exit
PB: predicated region body
PF: predicated region fallthrough
CT: control target
= control target key end

     0   :  { %9 = vsyncpa [#allocation3], 0  ;;  %s5620_s0 = inlined_call_operand.hbm [shape: f32[2,4,16], index: 0, kind: input, shape index: {}]   ;;  %s5621_s1 = inlined_call_operand.hbm [shape: f32[2,4,32], index: 1, kind: input, shape index: {}]   ;;  %s5622_s2 = inlined_call_operand.hbm [shape: f32[4,16,96], index: 2, kind: input, shape index: {}]   ;;  %s5623_s3 = inlined_call_operand.hbm [shape: f32[4,32,96], index: 3, kind: input, shape index: {}]   ;;  %s5624_s4 = inlined_call_operand.hbm [shape: f32[2,4,32], index: 4, kind: output, shape index: {}]  }
   0x1   :  { %10 = vsyncpa [#allocation6], 0 }
   0x2   :  { %11 = vsyncpa [#allocation9], 0 }
   0x3   :  { %12 = vsyncpa [#allocation4], 0  ;;  %s5062_s15 = smov [#allocation5]   ;;  %s5063_s17 = smov [#allocation2]  }
   0x4   :  { %s30_s16 = sshll.u32 %s5062_s15, 4  ;;  %s18_s18 = sshll.u32 %s5063_s17, 4  ;;  %s31_s16 = int_to_ptr.vmem [resolvable:$true] %s30_s16  ;;  %s19_s18 = int_to_ptr.vmem [resolvable:$true] %s18_s18 }
   0x5   :  { %s4962_s19 = scalar_lea.vmem %s31_s16, 128  ;;  %p4967_p1 = scmp.lt.s32.totalorder %s31_s16, %s31_s16 }
   0x6   :  { %p4963_p0 = scmp.ne.s32.totalorder %s31_s16, %s4962_s19  ;;  %p4968_p2 = scmp.lt.s32.totalorder %s4962_s19, %s4962_s19 }
   0x8   :  { %p4969_p3 = por %p4968_p2, %p4967_p1 }
   0xa   :  { %p4970_p4 = pnand %p4969_p3, %p4963_p0 }
   0xc   :  { %4973 = shalt.err (!%p4970_p4)
}
   0xd   :  { %s5064_s20 = smov 64   ;;  %s5065_s21 = smov 4  }
   0xe   :  { %36 = dma.hbm_to_vmem [thread:$0]  %s5621_s1, 128, %s31_s16, [#allocation6], %s5064_s20, %s5064_s20, %s5065_s21  }
   0xf   :  { %s4982_s24 = scalar_lea.vmem %s19_s18, 128  ;;  %p4987_p6 = scmp.lt.s32.totalorder %s19_s18, %s19_s18 }
  0x10   :  { %p4983_p5 = scmp.ne.s32.totalorder %s19_s18, %s4982_s24  ;;  %p4988_p7 = scmp.lt.s32.totalorder %s4982_s24, %s4982_s24 }
  0x12   :  { %p4989_p8 = por %p4988_p7, %p4987_p6 }
  0x14   :  { %p4990_p9 = pnand %p4989_p8, %p4983_p5 }
  0x16   :  { %4993 = shalt.err (!%p4990_p9)
}
  0x17   :  { %24 = dma.hbm_to_vmem [thread:$0]  %s5620_s0, 128, %s19_s18, [#allocation3], %s5064_s20, %s5064_s20, %s5065_s21  }
  0x18   :  { %s5066_s27 = smov [#allocation7]  }
  0x19   :  { %s42_s28 = sshll.u32 %s5066_s27, 4  ;;  %s43_s28 = int_to_ptr.vmem [resolvable:$true] %s42_s28 }
  0x1a   :  { %s5002_s29 = scalar_lea.vmem %s43_s28, 1024  ;;  %p5007_p11 = scmp.lt.s32.totalorder %s43_s28, %s43_s28 }
  0x1b   :  { %p5003_p10 = scmp.ne.s32.totalorder %s43_s28, %s5002_s29  ;;  %p5008_p12 = scmp.lt.s32.totalorder %s5002_s29, %s5002_s29 }
  0x1d   :  { %p5009_p13 = por %p5008_p12, %p5007_p11 }
  0x1f   :  { %p5010_p0 = pnand %p5009_p13, %p5003_p10 }
  0x21   :  { %5013 = shalt.err (!%p5010_p0)
}
  0x22   :  { %s5067_s1 = smov 128   ;;  %s5068_s30 = smov 8  }
  0x23   :  { %48 = dma.hbm_to_vmem [thread:$0]  %s5622_s2, 1024, %s43_s28, [#allocation6], %s5067_s1, %s5067_s1, %s5068_s30  }
  0x24   :  { %s5069_s7 = smov [#allocation8]  }
  0x25   :  { %s54_s8 = sshll.u32 %s5069_s7, 4  ;;  %s55_s8 = int_to_ptr.vmem [resolvable:$true] %s54_s8 }
  0x26   :  { %s5022_s0 = scalar_lea.vmem %s55_s8, 2048  ;;  %p5027_p2 = scmp.lt.s32.totalorder %s55_s8, %s55_s8 }
  0x27   :  { %p5023_p1 = scmp.ne.s32.totalorder %s55_s8, %s5022_s0  ;;  %p5028_p3 = scmp.lt.s32.totalorder %s5022_s0, %s5022_s0 }
  0x29   :  { %p5029_p4 = por %p5028_p3, %p5027_p2 }
  0x2b   :  { %p5030_p5 = pnand %p5029_p4, %p5023_p1 }
  0x2d   :  { %5033 = shalt.err (!%p5030_p5)
}
  0x2e   :  { %60 = dma.hbm_to_vmem [thread:$0]  %s5623_s3, 2048, %s55_s8, [#allocation9], %s5067_s1, %s5067_s1, %s5068_s30  }
  0x2f   :  { %5054 = dma.done.wait [#allocation3], 128  }
  0x30   :  { %5055 = vsyncadd [#allocation3], 4294967168 }
  0x31   :  { %5056 = dma.done.wait [#allocation6], 1152  }
  0x32   :  { %5057 = vsyncadd [#allocation6], 4294966144 }
  0x33   :  { %5058 = dma.done.wait [#allocation9], 2048  }
  0x34   :  { %5059 = vsyncadd [#allocation9], 4294965248  ;;  %v73_v0 = vld [vmem:[#allocation2] sm:$0xf]  ;;  %v75_v1 = vld [vmem:[#allocation5] sm:$0xf]  ;;  %v153_v10 = vlaneseq }
  0x35   :  { %85 = vxpose.xlu0.b32.start.end [1/1] (short) (narrow) %v73_v0, 16  ;;  %1871 = vxpose.xlu1.b32.start.end [1/1] (short) (narrow) %v75_v1, 32  ;;  %v74_v2 = vld [vmem:[#allocation2 + $0x4] sm:$0xf]  ;;  %v77_v3 = vld [vmem:[#allocation7] sm:$0xff]  ;;  %v78_v5 = vld [vmem:[#allocation7 + $0x8] sm:$0xff] }
  0x36   :  { %v76_v4 = vld [vmem:[#allocation5 + $0x4] sm:$0xf]  ;;  %v79_v6 = vld [vmem:[#allocation7 + $0x10] sm:$0xff]  ;;  %v5070_v8 = vmov 1983009808   ;;  %v154_v14 = vshrl.u32 %v153_v10, 7 }
  0x37   :  { %v80_v7 = vld [vmem:[#allocation7 + $0x18] sm:$0xff]  ;;  %v151_v9 = vunpack.c.l.s4 %v5070_v8  ;;  %v5071_v15 = vmov 1934713408   ;;  %v5072_v24 = vmov 0.0   ;;  %vm961_vm0 = vcmask 130048   ;;  %v82_v8 = vld [vmem:[#allocation7 + $0x28] sm:$0xff] }
  0x38   :  { %v182_v16 = vunpack.c.l.s4 %v5071_v15  ;;  %vm3527_vm1 = vcmask 261120   ;;  %s5073_s2 = smov 32   ;;  %vm4495_vm2 = vcmask 257024   ;;  %s5074_s3 = smov [#allocation10]  }
  0x39   :  { %v152_v13 = vunpack.c.0.s8 %v151_v9  ;;  %s4503_s11 = sshll.u32 %s5074_s3, 4  ;;  %s4504_s11 = int_to_ptr.vmem [resolvable:$true] %s4503_s11 }
  0x3a   :  { %117 = vxpose.xlu0.b32.start.end [1/1] (short) (narrow) %v74_v2, 16  ;;  %v183_v20 = vunpack.c.0.s8 %v182_v16  ;;  %s5034_s12 = scalar_lea.vmem %s4504_s11, 128  ;;  %p5039_p7 = scmp.lt.s32.totalorder %s4504_s11, %s4504_s11 }
  0x3b   :  { %v5122_v19 = vsub.s32 %v152_v13, %v154_v14  ;;  %p5035_p6 = scmp.ne.s32.totalorder %s4504_s11, %s5034_s12  ;;  %p5040_p8 = scmp.lt.s32.totalorder %s5034_s12, %s5034_s12 }
  0x3c   :  { %v5129_v27 = vsub.s32 %v183_v20, %v154_v14 }
  0x3d   :  { %p5041_p9 = por %p5040_p8, %p5039_p7 }
  0x3f   :  { %929 = vxpose.xlu0.b32.start [1/2] (short) (narrow) %v77_v3, 96  ;;  %v83_v3 = vld [vmem:[#allocation7 + $0x30] sm:$0xff]  ;;  %p5042_p10 = pnand %p5041_p9, %p5035_p6 }
  0x42   :  { %1903 = vxpose.xlu1.b32.start.end [1/1] (short) (narrow) %v76_v4, 32 }
  0x43   :  { %930 = vxpose.xlu0.b32.end [2/2] (short) (narrow) %v78_v5, 96  ;;  %v84_v5 = vld [vmem:[#allocation7 + $0x38] sm:$0xff] }
  0x4f   :  { %1123 = vxpose.xlu1.b32.start [1/2] (short) (narrow) %v79_v6, 96 }
  0x53   :  { %1124 = vxpose.xlu1.b32.end [2/2] (short) (narrow) %v80_v7, 96  ;;  %v81_v7 = vld [vmem:[#allocation7 + $0x20] sm:$0xff] }
  0xb1   :  { %v101_v11 = vpop.trf.xlu0  ;;  %v5118_v12 = vpop.trf.xlu1 }
  0xb2   :  { %v156_v23 = vrot.slane %v101_v11, %v5122_v19  ;;  %v149_v28 = vcombine.high %v101_v11, %v5072_v24 }
  0xb4   :  { %v163_v38 = vrot.slane %v149_v28, %v5122_v19 }
  0xb5   :  { %v102_v17 = vpop.trf.xlu0  ;;  %v5120_v18 = vpop.trf.xlu1 }
  0xb6   :  { %v222_v41 = vrot.slane %v102_v17, %v5122_v19  ;;  %v215_v47 = vcombine.high %v102_v17, %v5072_v24 }
  0xb8   :  { %v229_v53 = vrot.slane %v215_v47, %v5122_v19 }
  0xb9   :  { %v133_v21 = vpop.trf.xlu0  ;;  %v5124_v22 = vpop.trf.xlu1 }
  0xba   :  { %v164_v25 = vcombine.high %v133_v21, %v5072_v24  ;;  %v171_v26 = vrot.slane %v133_v21, %v5122_v19 }
  0xbc   :  { %v179_v29 = vcombine.low %v156_v23, %v171_v26  ;;  %v180_v30 = vcombine.high %v156_v23, %v171_v26  ;;  %v178_v34 = vrot.slane %v164_v25, %v5122_v19 }
  0xbd   :  { %v134_v31 = vpop.trf.xlu0  ;;  %v5132_v32 = vpop.trf.xlu1 }
  0xbe   :  { %v187_v33 = vrot.slane %v179_v29, %v5129_v27  ;;  %v237_v35 = vrot.slane %v134_v31, %v5122_v19  ;;  %v194_v37 = vrot.slane %v180_v30, %v5129_v27  ;;  %v195_v42 = vcombine.low %v163_v38, %v178_v34 }
  0xbf   :  { %v230_v43 = vcombine.high %v134_v31, %v5072_v24  ;;  %v196_v49 = vcombine.high %v163_v38, %v178_v34  ;;  %v2140_v9 = vrot.slane %v5132_v32, %v5122_v19  ;;  %v2133_v15 = vcombine.high %v5132_v32, %v5072_v24 }
  0xc0   :  { %281 = vxpose.xlu0.b32.start.end [1/1] (short) (narrow) %v187_v33, 8  ;;  %v211_v36 = vcombine.high %v187_v33, %v5072_v24  ;;  %v212_v44 = vcombine.high %v194_v37, %v5072_v24  ;;  %v246_v45 = vcombine.high %v222_v41, %v237_v35  ;;  %v203_v48 = vrot.slane %v195_v42, %v5129_v27 }
  0xc1   :  { %v5140_v39 = vpop.trf.xlu1  ;;  %v945_v40 = vpop.trf.xlu0  ;;  %v244_v50 = vrot.slane %v230_v43, %v5122_v19  ;;  %v210_v54 = vrot.slane %v196_v49, %v5129_v27  ;;  %v245_v55 = vcombine.low %v222_v41, %v237_v35  ;;  %v2147_v21 = vrot.slane %v2133_v15, %v5122_v19 }
  0xc2   :  { %313 = vxpose.xlu1.b32.start.end [1/1] (short) (narrow) %v211_v36, 8  ;;  %4739 = vmatprep.mubr.msk.f32.mxu0 %vm961_vm0, %v945_v40  ;;  %v260_v51 = vrot.slane %v246_v45, %v5129_v27  ;;  %v213_v56 = vcombine.high %v203_v48, %v5072_v24  ;;  %v2074_v32 = vrot.slane %v5124_v22, %v5122_v19 }
  0xc3   :  { %v262_v57 = vcombine.high %v229_v53, %v244_v50  ;;  %v253_v58 = vrot.slane %v245_v55, %v5129_v27  ;;  %v214_v60 = vcombine.high %v210_v54, %v5072_v24  ;;  %v261_v2 = vcombine.low %v229_v53, %v244_v50 }
  0xc4   :  { %345 = vxpose.xlu0.b32.start.end [1/1] (short) (narrow) %v194_v37, 8  ;;  %v278_v1 = vcombine.high %v260_v51, %v5072_v24  ;;  %v2067_v38 = vcombine.high %v5124_v22, %v5072_v24 }
  0xc5   :  { %v5146_v46 = vpop.trf.xlu1  ;;  %v276_v61 = vrot.slane %v262_v57, %v5129_v27  ;;  %v277_v62 = vcombine.high %v253_v58, %v5072_v24  ;;  %v269_v4 = vrot.slane %v261_v2, %v5129_v27  ;;  %v5169_v11 = vpop.trf.xlu0 }
  0xc6   :  { %377 = vxpose.xlu1.b32.start.end [1/1] (short) (narrow) %v212_v44, 8  ;;  %v2081_v47 = vrot.slane %v2067_v38, %v5122_v19 }
  0xc7   :  { %v280_v0 = vcombine.high %v276_v61, %v5072_v24  ;;  %v279_v6 = vcombine.high %v269_v4, %v5072_v24 }
  0xc8   :  { %409 = vxpose.xlu0.b32.start.end [1/1] (short) (narrow) %v203_v48, 8 }
  0xc9   :  { %v5152_v52 = vpop.trf.xlu1  ;;  %v5177_v20 = vpop.trf.xlu0 }
  0xca   :  { %601 = vxpose.xlu1.b32.start.end [1/1] (short) (narrow) %v260_v51, 8  ;;  %v2089_v34 = vrot.slane %v5152_v52, %v5122_v19  ;;  %v2082_v41 = vcombine.high %v5152_v52, %v5072_v24 }
  0xcc   :  { %473 = vxpose.xlu0.b32.start.end [1/1] (short) (narrow) %v210_v54, 8  ;;  %v2097_v42 = vcombine.low %v2074_v32, %v2089_v34  ;;  %v2096_v48 = vrot.slane %v2082_v41, %v5122_v19  ;;  %v2098_v49 = vcombine.high %v2074_v32, %v2089_v34  ;;  %v1950_v34 = vcombine.high %v5140_v39, %v5072_v24 }
  0xcd   :  { %v1922_v59 = vpop.trf.xlu1  ;;  %v5185_v31 = vpop.trf.xlu0 }
  0xce   :  { %441 = vxpose.xlu1.b32.start.end [1/1] (short) (narrow) %v213_v56, 8  ;;  %v2155_v10 = vrot.slane %v1922_v59, %v5122_v19  ;;  %v2148_v16 = vcombine.high %v1922_v59, %v5072_v24  ;;  %v2105_v50 = vrot.slane %v2097_v42, %v5129_v27  ;;  %v2112_v54 = vrot.slane %v2098_v49, %v5129_v27 }
  0xcf   :  { %v2113_v55 = vcombine.low %v2081_v47, %v2096_v48  ;;  %v2008_v56 = vrot.slane %v5120_v18, %v5122_v19  ;;  %v1964_v42 = vrot.slane %v1950_v34, %v5122_v19 }
  0xd0   :  { %537 = vxpose.xlu0.b32.start.end [1/1] (short) (narrow) %v253_v58, 8  ;;  %v2163_v13 = vcombine.low %v2140_v9, %v2155_v10  ;;  %v2162_v23 = vrot.slane %v2148_v16, %v5122_v19  ;;  %v2164_v25 = vcombine.high %v2140_v9, %v2155_v10  ;;  %v2129_v53 = vcombine.high %v2105_v50, %v5072_v24 }
  0xd1   :  { %v1139_v63 = vpop.trf.xlu1  ;;  %v5197_v40 = vpop.trf.xlu0  ;;  %v2023_v58 = vrot.slane %v5146_v46, %v5122_v19  ;;  %v2130_v59 = vcombine.high %v2112_v54, %v5072_v24 }
  0xd2   :  { %505 = vxpose.xlu1.b32.start.end [1/1] (short) (narrow) %v214_v60, 8  ;;  %4761 = vmatprep.mubr.msk.f32.mxu1 %vm961_vm0, %v1139_v63  ;;  %v2171_v17 = vrot.slane %v2163_v13, %v5129_v27  ;;  %v2178_v29 = vrot.slane %v2164_v25, %v5129_v27  ;;  %v2179_v30 = vcombine.low %v2147_v21, %v2162_v23 }
  0xd3   :  { %v2180_v37 = vcombine.high %v2147_v21, %v2162_v23  ;;  %v2121_v60 = vrot.slane %v2113_v55, %v5129_v27  ;;  %v2001_v63 = vcombine.high %v5120_v18, %v5072_v24  ;;  %v1957_v21 = vrot.slane %v5140_v39, %v5122_v19 }
  0xd4   :  { %569 = vxpose.xlu0.b32.start.end [1/1] (short) (narrow) %v277_v62, 8  ;;  %v2195_v28 = vcombine.high %v2171_v17, %v5072_v24  ;;  %v2196_v35 = vcombine.high %v2178_v29, %v5072_v24  ;;  %v2187_v36 = vrot.slane %v2179_v30, %v5129_v27  ;;  %v1935_v30 = vcombine.high %v5118_v12, %v5072_v24 }
  0xd5   :  { %v5171_v14 = vpop.trf.xlu1  ;;  %v2194_v44 = vrot.slane %v2180_v37, %v5129_v27  ;;  %v5209_v51 = vpop.trf.xlu0  ;;  %v2131_v2 = vcombine.high %v2121_v60, %v5072_v24 }
  0xd6   :  { %761 = vxpose.xlu1.b32.start.end [1/1] (short) (narrow) %v280_v0, 8  ;;  %v2197_v43 = vcombine.high %v2187_v36, %v5072_v24  ;;  %v2016_v0 = vcombine.high %v5146_v46, %v5072_v24  ;;  %v1949_v38 = vrot.slane %v1935_v30, %v5122_v19 }
  0xd7   :  { %v2198_v22 = vcombine.high %v2194_v44, %v5072_v24 }
  0xd8   :  { %633 = vxpose.xlu0.b32.start.end [1/1] (short) (narrow) %v278_v1, 8  ;;  %v2031_v1 = vcombine.low %v2008_v56, %v2023_v58 }
  0xd9   :  { %v5181_v26 = vpop.trf.xlu1  ;;  %v5217_v57 = vpop.trf.xlu0 }
  0xda   :  { %1509 = vxpose.xlu1.b32.start [1/2] (short) (narrow) %v83_v3, 96  ;;  %v2039_v46 = vrot.slane %v2031_v1, %v5129_v27 }
  0xdc   :  { %665 = vxpose.xlu0.b32.start.end [1/1] (short) (narrow) %v269_v4, 8  ;;  %v2063_v10 = vcombine.high %v2039_v46, %v5072_v24 }
  0xdd   :  { %v5189_v33 = vpop.trf.xlu1  ;;  %v5231_v4 = vpop.trf.xlu0 }
  0xde   :  { %1510 = vxpose.xlu1.b32.end [2/2] (short) (narrow) %v84_v5, 96  ;;  %v2015_v5 = vrot.slane %v2001_v63, %v5122_v19 }
  0xe0   :  { %729 = vxpose.xlu0.b32.start.end [1/1] (short) (narrow) %v276_v61, 8  ;;  %v2114_v61 = vcombine.high %v2081_v47, %v2096_v48  ;;  %v1981_v47 = vcombine.low %v1949_v38, %v1964_v42 }
  0xe1   :  { %v5203_v45 = vpop.trf.xlu1  ;;  %v5239_v9 = vpop.trf.xlu0 }
  0xe2   :  { %v2128_v3 = vrot.slane %v2114_v61, %v5129_v27  ;;  %v1989_v55 = vrot.slane %v1981_v47, %v5129_v27 }
  0xe4   :  { %697 = vxpose.xlu0.b32.start.end [1/1] (short) (narrow) %v279_v6, 8  ;;  %v2132_v18 = vcombine.high %v2128_v3, %v5072_v24 }
  0xe5   :  { %v5211_v52 = vpop.trf.xlu1 }
  0xe8   :  { %1316 = vxpose.xlu0.b32.start [1/2] (short) (narrow) %v81_v7, 96  ;;  %v2030_v7 = vrot.slane %v2016_v0, %v5122_v19 }
  0xe9   :  { %v5223_v62 = vpop.trf.xlu1 }
  0xea   :  { %v2047_v15 = vcombine.low %v2015_v5, %v2030_v7  ;;  %v2048_v23 = vcombine.high %v2015_v5, %v2030_v7  ;;  %v1860_v7 = vld [vmem:[#allocation8 + $0x28] sm:$0xff] }
  0xec   :  { %1317 = vxpose.xlu0.b32.end [2/2] (short) (narrow) %v82_v8, 96  ;;  %v2032_v8 = vcombine.high %v2008_v56, %v2023_v58  ;;  %v2062_v37 = vrot.slane %v2048_v23, %v5129_v27  ;;  %v1999_v58 = vcombine.high %v1989_v55, %v5072_v24 }
  0xed   :  { %v5234_v6 = vpop.trf.xlu1 }
  0xee   :  { %v2046_v13 = vrot.slane %v2032_v8, %v5129_v27 }
  0xf0   :  { %v2064_v25 = vcombine.high %v2046_v13, %v5072_v24 }
  0xf1   :  { %v5243_v16 = vpop.trf.xlu1 }
  0xf5   :  { %v5255_v32 = vpop.trf.xlu1 }
  0xf9   :  { %v5267_v39 = vpop.trf.xlu1 }
 0x107   :  { %2999 = vxpose.xlu1.b32.start.end [1/1] (short) (narrow) %v2195_v28, 8  ;;  %v2055_v28 = vrot.slane %v2047_v15, %v5129_v27  ;;  %v1862_v15 = vld [vmem:[#allocation8 + $0x38] sm:$0xff] }
 0x10b   :  { %3063 = vxpose.xlu1.b32.start.end [1/1] (short) (narrow) %v2196_v35, 8 }
 0x10f   :  { %3127 = vxpose.xlu1.b32.start.end [1/1] (short) (narrow) %v2197_v43, 8 }
 0x113   :  { %3191 = vxpose.xlu1.b32.start.end [1/1] (short) (narrow) %v2198_v22, 8 }
 0x115   :  { %2967 = vxpose.xlu0.b32.start.end [1/1] (short) (narrow) %v2171_v17, 8  ;;  %v1942_v17 = vrot.slane %v5118_v12, %v5122_v19  ;;  %v2066_v12 = vcombine.high %v2062_v37, %v5072_v24 }
 0x117   :  { %2743 = vxpose.xlu1.b32.start.end [1/1] (short) (narrow) %v2129_v53, 8  ;;  %v1965_v35 = vcombine.low %v1942_v17, %v1957_v21  ;;  %v1966_v43 = vcombine.high %v1942_v17, %v1957_v21  ;;  %v1982_v53 = vcombine.high %v1949_v38, %v1964_v42  ;;  %v1855_v21 = vld [vmem:[#allocation8] sm:$0xff] }
 0x119   :  { %3031 = vxpose.xlu0.b32.start.end [1/1] (short) (narrow) %v2178_v29, 8  ;;  %v5251_v29 = vpop.trf.xlu0  ;;  %v1980_v49 = vrot.slane %v1966_v43, %v5129_v27 }
 0x11b   :  { %2807 = vxpose.xlu1.b32.start.end [1/1] (short) (narrow) %v2130_v59, 8  ;;  %v1996_v59 = vrot.slane %v1982_v53, %v5129_v27 }
 0x11d   :  { %3095 = vxpose.xlu0.b32.start.end [1/1] (short) (narrow) %v2187_v36, 8  ;;  %v2065_v36 = vcombine.high %v2055_v28, %v5072_v24  ;;  %v5262_v41 = vpop.trf.xlu0  ;;  %v2000_v63 = vcombine.high %v1996_v59, %v5072_v24 }
 0x11f   :  { %2871 = vxpose.xlu1.b32.start.end [1/1] (short) (narrow) %v2131_v2, 8  ;;  %v1859_v2 = vld [vmem:[#allocation8 + $0x20] sm:$0xff] }
 0x121   :  { %3159 = vxpose.xlu0.b32.start.end [1/1] (short) (narrow) %v2194_v44, 8  ;;  %v1973_v44 = vrot.slane %v1965_v35, %v5129_v27  ;;  %v5271_v22 = vpop.trf.xlu0  ;;  %v1857_v35 = vld [vmem:[#allocation8 + $0x10] sm:$0xff] }
 0x123   :  { %2935 = vxpose.xlu1.b32.start.end [1/1] (short) (narrow) %v2132_v18, 8  ;;  %v1997_v48 = vcombine.high %v1973_v44, %v5072_v24 }
 0x125   :  { %2711 = vxpose.xlu0.b32.start.end [1/1] (short) (narrow) %v2105_v50, 8  ;;  %v5273_v50 = vpop.trf.xlu1 }
 0x127   :  { %2487 = vxpose.xlu1.b32.start.end [1/1] (short) (narrow) %v2063_v10, 8 }
 0x129   :  { %2775 = vxpose.xlu0.b32.start.end [1/1] (short) (narrow) %v2112_v54, 8  ;;  %v1998_v54 = vcombine.high %v1980_v49, %v5072_v24 }
 0x12b   :  { %2551 = vxpose.xlu1.b32.start.end [1/1] (short) (narrow) %v2064_v25, 8 }
 0x12d   :  { %2839 = vxpose.xlu0.b32.start.end [1/1] (short) (narrow) %v2121_v60, 8 }
 0x12f   :  { %2615 = vxpose.xlu1.b32.start.end [1/1] (short) (narrow) %v2065_v36, 8 }
 0x131   :  { %2903 = vxpose.xlu0.b32.start.end [1/1] (short) (narrow) %v2128_v3, 8 }
 0x133   :  { %2679 = vxpose.xlu1.b32.start.end [1/1] (short) (narrow) %v2066_v12, 8 }
 0x135   :  { %2455 = vxpose.xlu0.b32.start.end [1/1] (short) (narrow) %v2039_v46, 8  ;;  %v1861_v46 = vld [vmem:[#allocation8 + $0x30] sm:$0xff] }
 0x137   :  { %2231 = vxpose.xlu1.b32.start.end [1/1] (short) (narrow) %v1997_v48, 8  ;;  %v1858_v48 = vld [vmem:[#allocation8 + $0x18] sm:$0xff] }
 0x139   :  { %2519 = vxpose.xlu0.b32.start.end [1/1] (short) (narrow) %v2046_v13, 8 }
 0x13b   :  { %2295 = vxpose.xlu1.b32.start.end [1/1] (short) (narrow) %v1998_v54, 8 }
 0x13c   :  { %v297_v56 = vpop.trf.xlu0 }
 0x13d   :  { %2583 = vxpose.xlu0.b32.start.end [1/1] (short) (narrow) %v2055_v28, 8  ;;  %v1856_v28 = vld [vmem:[#allocation8 + $0x8] sm:$0xff] }
 0x13e   :  { %v329_v60 = vpop.trf.xlu1 }
 0x13f   :  { %2359 = vxpose.xlu1.b32.start.end [1/1] (short) (narrow) %v1999_v58, 8 }
 0x140   :  { %v361_v61 = vpop.trf.xlu0 }
 0x141   :  { %2647 = vxpose.xlu0.b32.start.end [1/1] (short) (narrow) %v2062_v37, 8 }
 0x142   :  { %v393_v0 = vpop.trf.xlu1 }
 0x143   :  { %2423 = vxpose.xlu1.b32.start.end [1/1] (short) (narrow) %v2000_v63, 8  ;;  %v801_v42 = vcombine.low %v329_v60, %v393_v0 }
 0x144   :  { %v425_v1 = vpop.trf.xlu0 }
 0x145   :  { %2199 = vxpose.xlu0.b32.start.end [1/1] (short) (narrow) %v1973_v44, 8  ;;  %v793_v44 = vcombine.low %v297_v56, %v361_v61  ;;  %v808_v58 = vrot.slane %v801_v42, %v5122_v19 }
 0x146   :  { %v617_v3 = vpop.trf.xlu1 }
 0x147   :  { %3689 = vxpose.xlu1.b32.start [1/4] (short) (narrow) %v1859_v2, 96  ;;  %v800_v0 = vrot.slane %v793_v44, %v5122_v19 }
 0x148   :  { %v489_v5 = vpop.trf.xlu0 }
 0x149   :  { %2263 = vxpose.xlu0.b32.start.end [1/1] (short) (narrow) %v1980_v49, 8  ;;  %v809_v43 = vcombine.low %v425_v1, %v489_v5 }
 0x14a   :  { %v457_v8 = vpop.trf.xlu1 }
 0x14b   :  { %3690 = vxpose.xlu1.b32.cont [2/4] (short) (narrow) %v1860_v7, 96  ;;  %v825_v7 = vcombine.low %v800_v0, %v808_v58 }
 0x14c   :  { %v553_v18 = vpop.trf.xlu0 }
 0x14d   :  { %2327 = vxpose.xlu0.b32.start.end [1/1] (short) (narrow) %v1989_v55, 8  ;;  %v861_v12 = vcombine.low %v553_v18, %v617_v3 }
 0x14e   :  { %v521_v10 = vpop.trf.xlu1 }
 0x14f   :  { %3691 = vxpose.xlu1.b32.cont [3/4] (short) (narrow) %v1861_v46, 96  ;;  %v817_v36 = vcombine.low %v457_v8, %v521_v10  ;;  %v868_v63 = vrot.slane %v861_v12, %v5122_v19 }
 0x150   :  { %v585_v13 = vpop.trf.xlu0 }
 0x151   :  { %2391 = vxpose.xlu0.b32.start.end [1/1] (short) (narrow) %v1996_v59, 8  ;;  %v824_v49 = vrot.slane %v817_v36, %v5122_v19  ;;  %v816_v59 = vrot.slane %v809_v43, %v5122_v19 }
 0x152   :  { %v777_v17 = vpop.trf.xlu1 }
 0x153   :  { %3692 = vxpose.xlu1.b32.end [4/4] (short) (narrow) %v1862_v15, 96  ;;  %v841_v61 = vcombine.low %v816_v59, %v824_v49 }
 0x154   :  { %v649_v23 = vpop.trf.xlu0 }
 0x155   :  { %3495 = vxpose.xlu0.b32.start [1/4] (short) (narrow) %v1855_v21, 96  ;;  %v869_v37 = vcombine.low %v585_v13, %v649_v23  ;;  %v849_v15 = vrot.slane %v841_v61, %v5129_v27  ;;  %v842_v23 = vcombine.high %v816_v59, %v824_v49 }
 0x156   :  { %v5280_v25 = vpop.trf.xlu1 }
 0x157   :  { %v876_v53 = vrot.slane %v869_v37, %v5122_v19 }
 0x158   :  { %v681_v30 = vpop.trf.xlu0 }
 0x159   :  { %3496 = vxpose.xlu0.b32.cont [2/4] (short) (narrow) %v1856_v28, 96  ;;  %v893_v1 = vcombine.low %v868_v63, %v876_v53 }
 0x15a   :  { %v5282_v34 = vpop.trf.xlu1 }
 0x15b   :  { %v901_v10 = vrot.slane %v893_v1, %v5129_v27 }
 0x15c   :  { %v745_v38 = vpop.trf.xlu0 }
 0x15d   :  { %3497 = vxpose.xlu0.b32.cont [3/4] (short) (narrow) %v1857_v35, 96  ;;  %v877_v54 = vcombine.low %v681_v30, %v745_v38  ;;  %v833_v35 = vrot.slane %v825_v7, %v5129_v27  ;;  %v826_v38 = vcombine.high %v800_v0, %v808_v58  ;;  %v1868_v0 = vld [vmem:[#allocation8 + $0x68] sm:$0xff] }
 0x15e   :  { %v5284_v47 = vpop.trf.xlu1 }
 0x15f   :  { %v884_v2 = vrot.slane %v877_v54, %v5122_v19  ;;  %v857_v42 = vcombine.low %v833_v35, %v849_v15  ;;  %v858_v43 = vcombine.high %v833_v35, %v849_v15 }
 0x160   :  { %v713_v55 = vpop.trf.xlu0 }
 0x161   :  { %v885_v60 = vcombine.low %v713_v55, %v777_v17  ;;  %3498 = vxpose.xlu0.b32.end [4/4] (short) (narrow) %v1858_v48, 96  ;;  %v894_v17 = vcombine.high %v868_v63, %v876_v53  ;;  %v856_v48 = vrot.slane %v842_v23, %v5129_v27  ;;  %v840_v55 = vrot.slane %v826_v38, %v5129_v27 }
 0x162   :  { %v5292_v56 = vpop.trf.xlu1 }
 0x163   :  { %v892_v3 = vrot.slane %v885_v60, %v5122_v19  ;;  %v908_v44 = vrot.slane %v894_v17, %v5129_v27  ;;  %v859_v59 = vcombine.low %v840_v55, %v856_v48  ;;  %v860_v63 = vcombine.high %v840_v55, %v856_v48  ;;  %v1867_v60 = vld [vmem:[#allocation8 + $0x60] sm:$0xff] }
 0x164   :  { %v5296_v5 = vpop.trf.xlu0 }
 0x165   :  { %v909_v8 = vcombine.low %v884_v2, %v892_v3  ;;  %v910_v18 = vcombine.high %v884_v2, %v892_v3 }
 0x166   :  { %v5298_v46 = vpop.trf.xlu1 }
 0x167   :  { %v917_v13 = vrot.slane %v909_v8, %v5129_v27  ;;  %v924_v36 = vrot.slane %v910_v18, %v5129_v27 }
 0x168   :  { %v5303_v21 = vpop.trf.xlu0 }
 0x169   :  { %v925_v28 = vcombine.low %v901_v10, %v917_v13  ;;  %v926_v30 = vcombine.high %v901_v10, %v917_v13  ;;  %v927_v49 = vcombine.low %v908_v44, %v924_v36  ;;  %v928_v53 = vcombine.high %v908_v44, %v924_v36 }
 0x16a   :  { %v5307_v37 = vpop.trf.xlu1 }
 0x16b   :  { %4735 = vmatprep.subr.mxu0 %v925_v28  ;;  %4757 = vmatprep.subr.mxu1 %v926_v30 }
 0x16c   :  { %4736 = vmatpush3.msra.mxu0 %v925_v28  ;;  %4758 = vmatpush3.msra.mxu1 %v926_v30  ;;  %v5309_v12 = vpop.trf.xlu0 }
 0x16d   :  { %4737 = vmatprep.subr.mxu0 %v857_v42  ;;  %4759 = vmatprep.subr.mxu1 %v858_v43 }
 0x16e   :  { %4738 = vmatpush3.msra.mxu0 %v857_v42  ;;  %4760 = vmatpush3.msra.mxu1 %v858_v43  ;;  %v5313_v54 = vpop.trf.xlu1 }
 0x16f   :  { %4740 = vmatmul.mubr.msk.f32.vlgmr.msra.gmra.mxu0 %vm961_vm0, %v5169_v11  ;;  %4762 = vmatmul.mubr.msk.f32.vlgmr.msra.gmra.mxu1 %vm961_vm0, %v5171_v14 }
 0x170   :  { %4779 = vmatprep.subr.mxu0 %v927_v49  ;;  %4801 = vmatprep.subr.mxu1 %v928_v53  ;;  %v5320_v58 = vpop.trf.xlu0 }
 0x171   :  { %4742 = vmatprep.mubr.msk.f32.mxu0 %vm961_vm0, %v5177_v20  ;;  %4764 = vmatprep.mubr.msk.f32.mxu1 %vm961_vm0, %v5181_v26 }
 0x172   :  { %4780 = vmatpush3.msra.mxu0 %v927_v49  ;;  %4802 = vmatpush3.msra.mxu1 %v928_v53  ;;  %v5326_v11 = vpop.trf.xlu1 }
 0x173   :  { %4781 = vmatprep.subr.mxu0 %v859_v59  ;;  %4803 = vmatprep.subr.mxu1 %v860_v63 }
 0x174   :  { %4782 = vmatpush3.msra.mxu0 %v859_v59  ;;  %4804 = vmatpush3.msra.mxu1 %v860_v63  ;;  %v1336_v14 = vpop.trf.xlu0 }
 0x175   :  { %4743 = vmatmul.mubr.msk.f32.gmra.mxu0 %vm961_vm0, %v5185_v31  ;;  %4765 = vmatmul.mubr.msk.f32.gmra.mxu1 %vm961_vm0, %v5189_v33 }
 0x176   :  { %4745 = vmatprep.mubr.msk.f32.mxu0 %vm961_vm0, %v5197_v40  ;;  %4767 = vmatprep.mubr.msk.f32.mxu1 %vm961_vm0, %v5203_v45  ;;  %v1533_v20 = vpop.trf.xlu1  ;;  %v1869_v40 = vld [vmem:[#allocation8 + $0x70] sm:$0xff] }
 0x177   :  { %4075 = vxpose.xlu1.b32.start [1/4] (short) (narrow) %v1867_v60, 96 }
 0x178   :  { %v1337_v26 = vpop.trf.xlu0 }
 0x179   :  { %4746 = vmatmul.mubr.msk.f32.gmra.mxu0 %vm961_vm0, %v5209_v51  ;;  %4768 = vmatmul.mubr.msk.f32.gmra.mxu1 %vm961_vm0, %v5211_v52  ;;  %v1863_v52 = vld [vmem:[#allocation8 + $0x40] sm:$0xff] }
 0x17a   :  { %4748 = vmatprep.mubr.msk.f32.mxu0 %vm961_vm0, %v5217_v57  ;;  %4770 = vmatprep.mubr.msk.f32.mxu1 %vm961_vm0, %v5223_v62  ;;  %v1534_v31 = vpop.trf.xlu1  ;;  %v1870_v57 = vld [vmem:[#allocation8 + $0x78] sm:$0xff] }
 0x17b   :  { %4076 = vxpose.xlu1.b32.cont [2/4] (short) (narrow) %v1868_v0, 96 }
 0x17c   :  { %v1338_v33 = vpop.trf.xlu0 }
 0x17d   :  { %4749 = vmatmul.mubr.msk.f32.gmra.mxu0 %vm961_vm0, %v5231_v4  ;;  %4771 = vmatmul.mubr.msk.f32.gmra.mxu1 %vm961_vm0, %v5234_v6  ;;  %v1864_v6 = vld [vmem:[#allocation8 + $0x48] sm:$0xff] }
 0x17e   :  { %4751 = vmatprep.mubr.msk.f32.mxu0 %vm961_vm0, %v5239_v9  ;;  %4773 = vmatprep.mubr.msk.f32.mxu1 %vm961_vm0, %v5243_v16  ;;  %v1535_v45 = vpop.trf.xlu1 }
 0x17f   :  { %4077 = vxpose.xlu1.b32.cont [3/4] (short) (narrow) %v1869_v40, 96 }
 0x180   :  { %v1339_v51 = vpop.trf.xlu0 }
 0x181   :  { %4752 = vmatmul.mubr.msk.f32.gmra.mxu0 %vm961_vm0, %v5251_v29  ;;  %4774 = vmatmul.mubr.msk.f32.gmra.mxu1 %vm961_vm0, %v5255_v32  ;;  %v1865_v29 = vld [vmem:[#allocation8 + $0x50] sm:$0xff] }
 0x182   :  { %4754 = vmatprep.mubr.msk.f32.mxu0 %vm961_vm0, %v5262_v41  ;;  %4776 = vmatprep.mubr.msk.f32.mxu1 %vm961_vm0, %v5267_v39  ;;  %v1536_v62 = vpop.trf.xlu1  ;;  %v1866_v39 = vld [vmem:[#allocation8 + $0x58] sm:$0xff] }
 0x183   :  { %3882 = vxpose.xlu0.b32.start [1/4] (short) (narrow) %v1863_v52, 96  ;;  %4078 = vxpose.xlu1.b32.end [4/4] (short) (narrow) %v1870_v57, 96 }
 0x184   :  { %v1340_v4 = vpop.trf.xlu0 }
 0x185   :  { %4755 = vmatmul.mubr.msk.f32.gmra.mxu0 %vm961_vm0, %v5271_v22  ;;  %4777 = vmatmul.mubr.msk.f32.gmra.mxu1 %vm961_vm0, %v5273_v50 }
 0x186   :  { %4783 = vmatprep.mubr.msk.f32.mxu0 %vm961_vm0, %v5296_v5  ;;  %4805 = vmatprep.mubr.msk.f32.mxu1 %vm961_vm0, %v5280_v25  ;;  %v3015_v9 = vpop.trf.xlu1 }
 0x187   :  { %3883 = vxpose.xlu0.b32.cont [2/4] (short) (narrow) %v1864_v6, 96 }
 0x188   :  { %v1341_v16 = vpop.trf.xlu0 }
 0x189   :  { %4784 = vmatmul.mubr.msk.f32.vlgmr.msra.gmra.mxu0 %vm961_vm0, %v5303_v21  ;;  %4806 = vmatmul.mubr.msk.f32.vlgmr.msra.gmra.mxu1 %vm961_vm0, %v5282_v34 }
 0x18a   :  { %4786 = vmatprep.mubr.msk.f32.mxu0 %vm961_vm0, %v5309_v12  ;;  %4808 = vmatprep.mubr.msk.f32.mxu1 %vm961_vm0, %v5284_v47  ;;  %v3079_v32 = vpop.trf.xlu1 }
 0x18b   :  { %3884 = vxpose.xlu0.b32.cont [3/4] (short) (narrow) %v1865_v29, 96  ;;  %v3435_v3 = vcombine.low %v3015_v9, %v3079_v32 }
 0x18c   :  { %v1342_v41 = vpop.trf.xlu0 }
 0x18d   :  { %4787 = vmatmul.mubr.msk.f32.gmra.mxu0 %vm961_vm0, %v5320_v58  ;;  %4809 = vmatmul.mubr.msk.f32.gmra.mxu1 %vm961_vm0, %v5292_v56 }
 0x18e   :  { %4811 = vmatprep.mubr.msk.f32.mxu1 %vm961_vm0, %v5298_v46  ;;  %4789 = vmatprep.mubr.msk.f32.mxu0 %vm961_vm0, %v1336_v14  ;;  %v3143_v22 = vpop.trf.xlu1  ;;  %v5404_v46 = vrot.slane %v3435_v3, %v5122_v19 }
 0x18f   :  { %3885 = vxpose.xlu0.b32.end [4/4] (short) (narrow) %v1866_v39, 96 }
 0x190   :  { %v1343_v50 = vpop.trf.xlu0 }
 0x191   :  { %4790 = vmatmul.mubr.msk.f32.gmra.mxu0 %vm961_vm0, %v1337_v26  ;;  %4812 = vmatmul.mubr.msk.f32.gmra.mxu1 %vm961_vm0, %v5307_v37 }
 0x192   :  { %4814 = vmatprep.mubr.msk.f32.mxu1 %vm961_vm0, %v5313_v54  ;;  %4792 = vmatprep.mubr.msk.f32.mxu0 %vm961_vm0, %v1338_v33  ;;  %v3207_v25 = vpop.trf.xlu1 }
 0x193   :  { %v3451_v8 = vcombine.low %v3143_v22, %v3207_v25 }
 0x194   :  { %v2983_v34 = vpop.trf.xlu0 }
 0x195   :  { %4793 = vmatmul.mubr.msk.f32.gmra.mxu0 %vm961_vm0, %v1339_v51  ;;  %4815 = vmatmul.mubr.msk.f32.gmra.mxu1 %vm961_vm0, %v5326_v11  ;;  %v5409_v17 = vrot.slane %v3451_v8, %v5122_v19 }
 0x196   :  { %4817 = vmatprep.mubr.msk.f32.mxu1 %vm961_vm0, %v1533_v20  ;;  %4795 = vmatprep.mubr.msk.f32.mxu0 %vm961_vm0, %v1340_v4  ;;  %v2759_v47 = vpop.trf.xlu1 }
 0x198   :  { %v3047_v56 = vpop.trf.xlu0 }
 0x199   :  { %4796 = vmatmul.mubr.msk.f32.gmra.mxu0 %vm961_vm0, %v1341_v16  ;;  %4818 = vmatmul.mubr.msk.f32.gmra.mxu1 %vm961_vm0, %v1534_v31  ;;  %v3427_v1 = vcombine.low %v2983_v34, %v3047_v56 }
 0x19a   :  { %4820 = vmatprep.mubr.msk.f32.mxu1 %vm961_vm0, %v1535_v45  ;;  %4798 = vmatprep.mubr.msk.f32.mxu0 %vm961_vm0, %v1342_v41  ;;  %v2823_v61 = vpop.trf.xlu1 }
 0x19b   :  { %v5401_v7 = vrot.slane %v3427_v1, %v5122_v19  ;;  %v3367_v48 = vcombine.low %v2759_v47, %v2823_v61 }
 0x19c   :  { %v3111_v2 = vpop.trf.xlu0 }
 0x19d   :  { %4799 = vmatmul.mubr.msk.f32.gmra.mxu0 %vm961_vm0, %v1343_v50  ;;  %4821 = vmatmul.mubr.msk.f32.gmra.mxu1 %vm961_vm0, %v1536_v62  ;;  %v3459_v15 = vcombine.low %v5401_v7, %v5404_v46  ;;  %v5422_v58 = vrot.slane %v3367_v48, %v5122_v19  ;;  %v3460_v48 = vcombine.high %v5401_v7, %v5404_v46 }
 0x19e   :  { %v2887_v5 = vpop.trf.xlu1 }
 0x19f   :  { %v3467_v35 = vrot.slane %v3459_v15, %v5129_v27  ;;  %v3474_v46 = vrot.slane %v3460_v48, %v5129_v27 }
 0x1a0   :  { %v3175_v18 = vpop.trf.xlu0 }
 0x1a1   :  { %v3443_v10 = vcombine.low %v3111_v2, %v3175_v18 }
 0x1a2   :  { %v2951_v13 = vpop.trf.xlu1 }
 0x1a3   :  { %v5412_v21 = vrot.slane %v3443_v10, %v5122_v19  ;;  %v3383_v54 = vcombine.low %v2887_v5, %v2951_v13 }
 0x1a4   :  { %v2727_v23 = vpop.trf.xlu0 }
 0x1a5   :  { %v3475_v28 = vcombine.low %v5412_v21, %v5409_v17  ;;  %v5427_v14 = vrot.slane %v3383_v54, %v5122_v19 }
 0x1a6   :  { %v2503_v30 = vpop.trf.xlu1 }
 0x1a7   :  { %v3483_v36 = vrot.slane %v3475_v28, %v5129_v27 }
 0x1a8   :  { %v2791_v37 = vpop.trf.xlu0 }
 0x1a9   :  { %v3491_v38 = vcombine.low %v3467_v35, %v3483_v36  ;;  %v3492_v42 = vcombine.high %v3467_v35, %v3483_v36  ;;  %v3359_v12 = vcombine.low %v2727_v23, %v2791_v37 }
 0x1aa   :  { %v2567_v43 = vpop.trf.xlu1 }
 0x1ab   :  { %4823 = vmatprep.subr.mxu0 %v3491_v38  ;;  %4849 = vmatprep.subr.mxu1 %v3492_v42  ;;  %v5419_v53 = vrot.slane %v3359_v12, %v5122_v19  ;;  %v3299_v4 = vcombine.low %v2503_v30, %v2567_v43 }
 0x1ac   :  { %4824 = vmatpush3.msra.mxu0 %v3491_v38  ;;  %4850 = vmatpush3.msra.mxu1 %v3492_v42  ;;  %v2855_v44 = vpop.trf.xlu0  ;;  %v3476_v38 = vcombine.high %v5412_v21, %v5409_v17 }
 0x1ad   :  { %v3391_v11 = vcombine.low %v5419_v53, %v5422_v58  ;;  %v5440_v32 = vrot.slane %v3299_v4, %v5122_v19 }
 0x1ae   :  { %v2631_v49 = vpop.trf.xlu1 }
 0x1af   :  { %v3399_v31 = vrot.slane %v3391_v11, %v5129_v27 }
 0x1b0   :  { %v2919_v55 = vpop.trf.xlu0 }
 0x1b1   :  { %v3375_v59 = vcombine.low %v2855_v44, %v2919_v55 }
 0x1b2   :  { %v2695_v63 = vpop.trf.xlu1 }
 0x1b3   :  { %v5430_v60 = vrot.slane %v3375_v59, %v5122_v19  ;;  %v3315_v16 = vcombine.low %v2631_v49, %v2695_v63  ;;  %v3392_v59 = vcombine.high %v5419_v53, %v5422_v58  ;;  %v3490_v63 = vrot.slane %v3476_v38, %v5129_v27 }
 0x1b4   :  { %v2471_v20 = vpop.trf.xlu0 }
 0x1b5   :  { %v3407_v26 = vcombine.low %v5430_v60, %v5427_v14  ;;  %v3322_v50 = vrot.slane %v3315_v16, %v5122_v19  ;;  %v3408_v49 = vcombine.high %v5430_v60, %v5427_v14  ;;  %v3493_v53 = vcombine.low %v3474_v46, %v3490_v63 }
 0x1b6   :  { %v2247_v0 = vpop.trf.xlu1  ;;  %v3406_v58 = vrot.slane %v3392_v59, %v5129_v27 }
 0x1b7   :  { %v3415_v33 = vrot.slane %v3407_v26, %v5129_v27  ;;  %v3422_v14 = vrot.slane %v3408_v49, %v5129_v27 }
 0x1b8   :  { %v2535_v40 = vpop.trf.xlu0 }
 0x1b9   :  { %v3423_v45 = vcombine.low %v3399_v31, %v3415_v33  ;;  %v3424_v51 = vcombine.high %v3399_v31, %v3415_v33  ;;  %v3291_v57 = vcombine.low %v2471_v20, %v2535_v40  ;;  %v3494_v40 = vcombine.high %v3474_v46, %v3490_v63 }
 0x1ba   :  { %v2311_v52 = vpop.trf.xlu1 }
 0x1bb   :  { %4825 = vmatprep.subr.mxu0 %v3423_v45  ;;  %4851 = vmatprep.subr.mxu1 %v3424_v51  ;;  %v5437_v9 = vrot.slane %v3291_v57, %v5122_v19  ;;  %v3231_v13 = vcombine.low %v2247_v0, %v2311_v52  ;;  %v3425_v52 = vcombine.low %v3406_v58, %v3422_v14 }
 0x1bc   :  { %4826 = vmatpush3.msra.mxu0 %v3423_v45  ;;  %4852 = vmatpush3.msra.mxu1 %v3424_v51  ;;  %v2599_v62 = vpop.trf.xlu0  ;;  %v3426_v57 = vcombine.high %v3406_v58, %v3422_v14 }
 0x1bd   :  { %v3323_v22 = vcombine.low %v5437_v9, %v5440_v32  ;;  %v3238_v35 = vrot.slane %v3231_v13, %v5122_v19  ;;  %v3324_v60 = vcombine.high %v5437_v9, %v5440_v32 }
 0x1be   :  { %v2375_v6 = vpop.trf.xlu1 }
 0x1bf   :  { %v3331_v61 = vrot.slane %v3323_v22, %v5129_v27 }
 0x1c0   :  { %v2663_v29 = vpop.trf.xlu0 }
 0x1c1   :  { %v3307_v41 = vcombine.low %v2599_v62, %v2663_v29  ;;  %v3338_v62 = vrot.slane %v3324_v60, %v5129_v27 }
 0x1c2   :  { %v2439_v39 = vpop.trf.xlu1 }
 0x1c3   :  { %v3314_v25 = vrot.slane %v3307_v41, %v5122_v19  ;;  %v3247_v28 = vcombine.low %v2375_v6, %v2439_v39 }
 0x1c4   :  { %v2215_v34 = vpop.trf.xlu0 }
 0x1c5   :  { %v3339_v47 = vcombine.low %v3314_v25, %v3322_v50  ;;  %v3254_v43 = vrot.slane %v3247_v28, %v5122_v19  ;;  %v3340_v11 = vcombine.high %v3314_v25, %v3322_v50 }
 0x1c6   :  { %v3705_v56 = vpop.trf.xlu1 }
 0x1c7   :  { %v3347_v1 = vrot.slane %v3339_v47, %v5129_v27  ;;  %4857 = vmatprep.mubr.msk.f32.mxu1 %vm3527_vm1, %v3705_v56  ;;  %v3354_v51 = vrot.slane %v3340_v11, %v5129_v27 }
 0x1c8   :  { %v2279_v2 = vpop.trf.xlu0 }
 0x1c9   :  { %v3355_v3 = vcombine.low %v3331_v61, %v3347_v1  ;;  %v3356_v5 = vcombine.high %v3331_v61, %v3347_v1  ;;  %v3223_v18 = vcombine.low %v2215_v34, %v2279_v2  ;;  %v3357_v9 = vcombine.low %v3338_v62, %v3354_v51 }
 0x1ca   :  { %v3706_v8 = vpop.trf.xlu1  ;;  %v3358_v16 = vcombine.high %v3338_v62, %v3354_v51 }
 0x1cb   :  { %4827 = vmatprep.subr.mxu0 %v3355_v3  ;;  %4853 = vmatprep.subr.mxu1 %v3356_v5  ;;  %v3230_v23 = vrot.slane %v3223_v18, %v5122_v19 }
 0x1cc   :  { %4828 = vmatpush3.msra.mxu0 %v3355_v3  ;;  %4854 = vmatpush3.msra.mxu1 %v3356_v5  ;;  %v2343_v10 = vpop.trf.xlu0 }
 0x1cd   :  { %v3255_v42 = vcombine.low %v3230_v23, %v3238_v35  ;;  %v3256_v33 = vcombine.high %v3230_v23, %v3238_v35 }
 0x1ce   :  { %v5449_v15 = vpop.trf.xlu1 }
 0x1cf   :  { %v3263_v17 = vrot.slane %v3255_v42, %v5129_v27  ;;  %v3270_v29 = vrot.slane %v3256_v33, %v5129_v27 }
 0x1d0   :  { %v2407_v30 = vpop.trf.xlu0 }
 0x1d1   :  { %v3239_v36 = vcombine.low %v2343_v10, %v2407_v30 }
 0x1d2   :  { %v5453_v37 = vpop.trf.xlu1 }
 0x1d3   :  { %v3246_v12 = vrot.slane %v3239_v36, %v5122_v19 }
 0x1d4   :  { %v3511_v44 = vpop.trf.xlu0 }
 0x1d5   :  { %v3271_v54 = vcombine.low %v3246_v12, %v3254_v43  ;;  %4831 = vmatprep.mubr.msk.f32.mxu0 %vm3527_vm1, %v3511_v44  ;;  %v3272_v0 = vcombine.high %v3246_v12, %v3254_v43 }
 0x1d6   :  { %v3709_v55 = vpop.trf.xlu1 }
 0x1d7   :  { %v3279_v21 = vrot.slane %v3271_v54, %v5129_v27  ;;  %v3286_v4 = vrot.slane %v3272_v0, %v5129_v27 }
 0x1d8   :  { %v3512_v20 = vpop.trf.xlu0 }
 0x1d9   :  { %v3287_v26 = vcombine.low %v3263_v17, %v3279_v21  ;;  %v3288_v7 = vcombine.high %v3263_v17, %v3279_v21  ;;  %v3289_v41 = vcombine.low %v3270_v29, %v3286_v4  ;;  %v3290_v39 = vcombine.high %v3270_v29, %v3286_v4 }
 0x1da   :  { %v3710_v31 = vpop.trf.xlu1 }
 0x1db   :  { %4829 = vmatprep.subr.mxu0 %v3287_v26  ;;  %4855 = vmatprep.subr.mxu1 %v3288_v7 }
 0x1dc   :  { %4830 = vmatpush3.msra.mxu0 %v3287_v26  ;;  %4856 = vmatpush3.msra.mxu1 %v3288_v7  ;;  %v3513_v45 = vpop.trf.xlu0 }
 0x1dd   :  { %4832 = vmatmul.mubr.msk.f32.vlgmr.msra.gmra.mxu0 %vm3527_vm1, %v3512_v20  ;;  %4858 = vmatmul.mubr.msk.f32.vlgmr.msra.gmra.mxu1 %vm3527_vm1, %v3706_v8 }
 0x1de   :  { %4875 = vmatprep.subr.mxu0 %v3493_v53  ;;  %4901 = vmatprep.subr.mxu1 %v3494_v40  ;;  %v3711_v6 = vpop.trf.xlu1 }
 0x1df   :  { %4876 = vmatpush3.msra.mxu0 %v3493_v53  ;;  %4902 = vmatpush3.msra.mxu1 %v3494_v40 }
 0x1e0   :  { %4877 = vmatprep.subr.mxu0 %v3425_v52  ;;  %4903 = vmatprep.subr.mxu1 %v3426_v57  ;;  %v3514_v32 = vpop.trf.xlu0 }
 0x1e1   :  { %4878 = vmatpush3.msra.mxu0 %v3425_v52  ;;  %4904 = vmatpush3.msra.mxu1 %v3426_v57 }
 0x1e2   :  { %4879 = vmatprep.subr.mxu0 %v3357_v9  ;;  %4905 = vmatprep.subr.mxu1 %v3358_v16  ;;  %v3712_v22 = vpop.trf.xlu1 }
 0x1e3   :  { %4880 = vmatpush3.msra.mxu0 %v3357_v9  ;;  %4906 = vmatpush3.msra.mxu1 %v3358_v16 }
 0x1e4   :  { %4881 = vmatprep.subr.mxu0 %v3289_v41  ;;  %4907 = vmatprep.subr.mxu1 %v3290_v39  ;;  %v3515_v50 = vpop.trf.xlu0 }
 0x1e5   :  { %4834 = vmatprep.mubr.msk.f32.mxu0 %vm3527_vm1, %v3513_v45  ;;  %4860 = vmatprep.mubr.msk.f32.mxu1 %vm3527_vm1, %v5449_v15 }
 0x1e6   :  { %4882 = vmatpush3.msra.mxu0 %v3289_v41  ;;  %4908 = vmatpush3.msra.mxu1 %v3290_v39  ;;  %v3713_v25 = vpop.trf.xlu1 }
 0x1e7   :  { %4835 = vmatmul.mubr.msk.f32.gmra.mxu0 %vm3527_vm1, %v3514_v32  ;;  %4861 = vmatmul.mubr.msk.f32.gmra.mxu1 %vm3527_vm1, %v5453_v37 }
 0x1e8   :  { %4837 = vmatprep.mubr.msk.f32.mxu0 %vm3527_vm1, %v3515_v50  ;;  %4863 = vmatprep.mubr.msk.f32.mxu1 %vm3527_vm1, %v3709_v55  ;;  %v3516_v34 = vpop.trf.xlu0 }
 0x1ea   :  { %v3714_v47 = vpop.trf.xlu1 }
 0x1eb   :  { %4838 = vmatmul.mubr.msk.f32.gmra.mxu0 %vm3527_vm1, %v3516_v34  ;;  %4864 = vmatmul.mubr.msk.f32.gmra.mxu1 %vm3527_vm1, %v3710_v31 }
 0x1ec   :  { %v3517_v56 = vpop.trf.xlu0  ;;  %4866 = vmatprep.mubr.msk.f32.mxu1 %vm3527_vm1, %v3711_v6 }
 0x1ed   :  { %4840 = vmatprep.mubr.msk.f32.mxu0 %vm3527_vm1, %v3517_v56 }
 0x1ee   :  { %v3715_v61 = vpop.trf.xlu1 }
 0x1ef   :  { %4867 = vmatmul.mubr.msk.f32.gmra.mxu1 %vm3527_vm1, %v3712_v22 }
 0x1f0   :  { %v3518_v1 = vpop.trf.xlu0  ;;  %4869 = vmatprep.mubr.msk.f32.mxu1 %vm3527_vm1, %v3713_v25 }
 0x1f1   :  { %4841 = vmatmul.mubr.msk.f32.gmra.mxu0 %vm3527_vm1, %v3518_v1 }
 0x1f2   :  { %v3716_v2 = vpop.trf.xlu1 }
 0x1f3   :  { %4870 = vmatmul.mubr.msk.f32.gmra.mxu1 %vm3527_vm1, %v3714_v47 }
 0x1f4   :  { %v3519_v3 = vpop.trf.xlu0  ;;  %4872 = vmatprep.mubr.msk.f32.mxu1 %vm3527_vm1, %v3715_v61 }
 0x1f5   :  { %4843 = vmatprep.mubr.msk.f32.mxu0 %vm3527_vm1, %v3519_v3 }
 0x1f6   :  { %v4091_v5 = vpop.trf.xlu1 }
 0x1f7   :  { %4873 = vmatmul.mubr.msk.f32.gmra.mxu1 %vm3527_vm1, %v3716_v2 }
 0x1f8   :  { %v3520_v8 = vpop.trf.xlu0  ;;  %4909 = vmatprep.mubr.msk.f32.mxu1 %vm3527_vm1, %v4091_v5 }
 0x1f9   :  { %4844 = vmatmul.mubr.msk.f32.gmra.mxu0 %vm3527_vm1, %v3520_v8 }
 0x1fa   :  { %v4092_v18 = vpop.trf.xlu1 }
 0x1fb   :  { %4910 = vmatmul.mubr.msk.f32.vlgmr.msra.gmra.mxu1 %vm3527_vm1, %v4092_v18 }
 0x1fc   :  { %v3521_v10 = vpop.trf.xlu0 }
 0x1fd   :  { %4846 = vmatprep.mubr.msk.f32.mxu0 %vm3527_vm1, %v3521_v10 }
 0x1fe   :  { %v4093_v13 = vpop.trf.xlu1 }
 0x1ff   :  { %4912 = vmatprep.mubr.msk.f32.mxu1 %vm3527_vm1, %v4093_v13 }
 0x200   :  { %v3522_v15 = vpop.trf.xlu0 }
 0x201   :  { %4847 = vmatmul.mubr.msk.f32.gmra.mxu0 %vm3527_vm1, %v3522_v15 }
 0x202   :  { %v4094_v23 = vpop.trf.xlu1 }
 0x203   :  { %4913 = vmatmul.mubr.msk.f32.gmra.mxu1 %vm3527_vm1, %v4094_v23 }
 0x204   :  { %v3898_v28 = vpop.trf.xlu0 }
 0x205   :  { %4883 = vmatprep.mubr.msk.f32.mxu0 %vm3527_vm1, %v3898_v28 }
 0x206   :  { %v4095_v30 = vpop.trf.xlu1 }
 0x207   :  { %4915 = vmatprep.mubr.msk.f32.mxu1 %vm3527_vm1, %v4095_v30 }
 0x208   :  { %v3899_v35 = vpop.trf.xlu0 }
 0x209   :  { %4884 = vmatmul.mubr.msk.f32.vlgmr.msra.gmra.mxu0 %vm3527_vm1, %v3899_v35 }
 0x20a   :  { %v4096_v36 = vpop.trf.xlu1 }
 0x20b   :  { %4916 = vmatmul.mubr.msk.f32.gmra.mxu1 %vm3527_vm1, %v4096_v36 }
 0x20c   :  { %v3900_v37 = vpop.trf.xlu0 }
 0x20d   :  { %4886 = vmatprep.mubr.msk.f32.mxu0 %vm3527_vm1, %v3900_v37 }
 0x20e   :  { %v4097_v38 = vpop.trf.xlu1 }
 0x20f   :  { %4918 = vmatprep.mubr.msk.f32.mxu1 %vm3527_vm1, %v4097_v38 }
 0x210   :  { %v3901_v42 = vpop.trf.xlu0 }
 0x211   :  { %4887 = vmatmul.mubr.msk.f32.gmra.mxu0 %vm3527_vm1, %v3901_v42 }
 0x212   :  { %v4098_v43 = vpop.trf.xlu1 }
 0x213   :  { %4919 = vmatmul.mubr.msk.f32.gmra.mxu1 %vm3527_vm1, %v4098_v43 }
 0x214   :  { %v3902_v12 = vpop.trf.xlu0 }
 0x215   :  { %4889 = vmatprep.mubr.msk.f32.mxu0 %vm3527_vm1, %v3902_v12 }
 0x216   :  { %v4099_v44 = vpop.trf.xlu1 }
 0x217   :  { %4921 = vmatprep.mubr.msk.f32.mxu1 %vm3527_vm1, %v4099_v44 }
 0x218   :  { %v3903_v48 = vpop.trf.xlu0 }
 0x219   :  { %4890 = vmatmul.mubr.msk.f32.gmra.mxu0 %vm3527_vm1, %v3903_v48 }
 0x21a   :  { %v4100_v49 = vpop.trf.xlu1 }
 0x21b   :  { %4922 = vmatmul.mubr.msk.f32.gmra.mxu1 %vm3527_vm1, %v4100_v49 }
 0x21c   :  { %v3904_v54 = vpop.trf.xlu0 }
 0x21d   :  { %4892 = vmatprep.mubr.msk.f32.mxu0 %vm3527_vm1, %v3904_v54 }
 0x21e   :  { %v4101_v55 = vpop.trf.xlu1 }
 0x21f   :  { %4924 = vmatprep.mubr.msk.f32.mxu1 %vm3527_vm1, %v4101_v55 }
 0x220   :  { %v3905_v59 = vpop.trf.xlu0 }
 0x221   :  { %4893 = vmatmul.mubr.msk.f32.gmra.mxu0 %vm3527_vm1, %v3905_v59 }
 0x222   :  { %v4102_v17 = vpop.trf.xlu1 }
 0x223   :  { %4925 = vmatmul.mubr.msk.f32.gmra.mxu1 %vm3527_vm1, %v4102_v17 }
 0x224   :  { %v3906_v21 = vpop.trf.xlu0 }
 0x225   :  { %4895 = vmatprep.mubr.msk.f32.mxu0 %vm3527_vm1, %v3906_v21 }
 0x228   :  { %v3907_v63 = vpop.trf.xlu0 }
 0x229   :  { %4896 = vmatmul.mubr.msk.f32.gmra.mxu0 %vm3527_vm1, %v3907_v63 }
 0x22c   :  { %v3908_v11 = vpop.trf.xlu0 }
 0x22d   :  { %4898 = vmatprep.mubr.msk.f32.mxu0 %vm3527_vm1, %v3908_v11 }
 0x22f   :  { %v4741_v20 = vpop.f32.mrf.mxu0  ;;  %v4763_v26 = vpop.f32.mrf.mxu1 }
 0x230   :  { %v3909_v7 = vpop.trf.xlu0 }
 0x231   :  { %v1064_v46 = vpop.f32.mrf.mxu0  ;;  %v1257_v14 = vpop.f32.mrf.mxu1  ;;  %4899 = vmatmul.mubr.msk.f32.gmra.mxu0 %vm3527_vm1, %v3909_v7 }
 0x232   :  { %1734 = vxpose.xlu1.b32.start [1/12] (short) (narrow) %v1257_v14, 8  ;;  %1702 = vxpose.xlu0.b32.start [1/12] (short) (narrow) %v1064_v46, 8 }
 0x235   :  { %v4744_v60 = vpop.f32.mrf.mxu0  ;;  %v4766_v0 = vpop.f32.mrf.mxu1 }
 0x236   :  { %1735 = vxpose.xlu1.b32.cont [2/12] (short) (narrow) %v4763_v26, 8  ;;  %1703 = vxpose.xlu0.b32.cont [2/12] (short) (narrow) %v4741_v20, 8 }
 0x237   :  { %v1074_v31 = vpop.f32.mrf.mxu0  ;;  %v1267_v53 = vpop.f32.mrf.mxu1 }
 0x239   :  { %v4747_v58 = vpop.f32.mrf.mxu0  ;;  %v4769_v33 = vpop.f32.mrf.mxu1 }
 0x23a   :  { %1736 = vxpose.xlu1.b32.cont [3/12] (short) (narrow) %v1267_v53, 8  ;;  %1704 = vxpose.xlu0.b32.cont [3/12] (short) (narrow) %v1074_v31, 8 }
 0x23b   :  { %v1084_v40 = vpop.f32.mrf.mxu0  ;;  %v1277_v45 = vpop.f32.mrf.mxu1 }
 0x23d   :  { %v4750_v51 = vpop.f32.mrf.mxu0  ;;  %v4772_v52 = vpop.f32.mrf.mxu1 }
 0x23e   :  { %1737 = vxpose.xlu1.b32.cont [4/12] (short) (narrow) %v4766_v0, 8  ;;  %1705 = vxpose.xlu0.b32.cont [4/12] (short) (narrow) %v4744_v60, 8 }
 0x23f   :  { %v1094_v57 = vpop.f32.mrf.mxu0  ;;  %v1287_v62 = vpop.f32.mrf.mxu1 }
 0x241   :  { %v4753_v4 = vpop.f32.mrf.mxu0  ;;  %v4775_v6 = vpop.f32.mrf.mxu1 }
 0x242   :  { %1738 = vxpose.xlu1.b32.cont [5/12] (short) (narrow) %v1277_v45, 8  ;;  %1706 = vxpose.xlu0.b32.cont [5/12] (short) (narrow) %v1084_v40, 8 }
 0x243   :  { %v1104_v9 = vpop.f32.mrf.mxu0  ;;  %v1297_v16 = vpop.f32.mrf.mxu1 }
 0x245   :  { %v4756_v29 = vpop.f32.mrf.mxu0  ;;  %v4778_v32 = vpop.f32.mrf.mxu1 }
 0x246   :  { %1739 = vxpose.xlu1.b32.cont [6/12] (short) (narrow) %v4769_v33, 8  ;;  %1707 = vxpose.xlu0.b32.cont [6/12] (short) (narrow) %v4747_v58, 8 }
 0x247   :  { %v1114_v41 = vpop.f32.mrf.mxu0  ;;  %v1307_v39 = vpop.f32.mrf.mxu1 }
 0x249   :  { %v5526_v22 = vpop.f32.mrf.mxu0  ;;  %v5528_v50 = vpop.f32.mrf.mxu1 }
 0x24a   :  { %1740 = vxpose.xlu1.b32.cont [7/12] (short) (narrow) %v1287_v62, 8  ;;  %1708 = vxpose.xlu0.b32.cont [7/12] (short) (narrow) %v1094_v57, 8 }
 0x24b   :  { %v5530_v25 = vpop.f32.mrf.mxu0  ;;  %v5532_v34 = vpop.f32.mrf.mxu1 }
 0x24d   :  { %v5534_v47 = vpop.f32.mrf.mxu0  ;;  %v5536_v56 = vpop.f32.mrf.mxu1 }
 0x24e   :  { %1741 = vxpose.xlu1.b32.cont [8/12] (short) (narrow) %v4772_v52, 8  ;;  %1709 = vxpose.xlu0.b32.cont [8/12] (short) (narrow) %v4750_v51, 8 }
 0x24f   :  { %v5538_v61 = vpop.f32.mrf.mxu0  ;;  %v5540_v1 = vpop.f32.mrf.mxu1 }
 0x251   :  { %v5542_v2 = vpop.f32.mrf.mxu0  ;;  %v5544_v3 = vpop.f32.mrf.mxu1 }
 0x252   :  { %1742 = vxpose.xlu1.b32.cont [9/12] (short) (narrow) %v1297_v16, 8  ;;  %1710 = vxpose.xlu0.b32.cont [9/12] (short) (narrow) %v1104_v9, 8 }
 0x253   :  { %v5546_v5 = vpop.f32.mrf.mxu0  ;;  %v5548_v8 = vpop.f32.mrf.mxu1 }
 0x255   :  { %v5550_v18 = vpop.f32.mrf.mxu0  ;;  %v5552_v10 = vpop.f32.mrf.mxu1 }
 0x256   :  { %1743 = vxpose.xlu1.b32.cont [10/12] (short) (narrow) %v4775_v6, 8  ;;  %1711 = vxpose.xlu0.b32.cont [10/12] (short) (narrow) %v4753_v4, 8 }
 0x257   :  { %v5554_v13 = vpop.f32.mrf.mxu0  ;;  %v5556_v15 = vpop.f32.mrf.mxu1 }
 0x259   :  { %v5558_v23 = vpop.f32.mrf.mxu0  ;;  %v5560_v28 = vpop.f32.mrf.mxu1 }
 0x25a   :  { %1744 = vxpose.xlu1.b32.cont [11/12] (short) (narrow) %v1307_v39, 8  ;;  %1712 = vxpose.xlu0.b32.cont [11/12] (short) (narrow) %v1114_v41, 8 }
 0x25b   :  { %v5562_v30 = vpop.f32.mrf.mxu0  ;;  %v5564_v35 = vpop.f32.mrf.mxu1 }
 0x25d   :  { %v5566_v36 = vpop.f32.mrf.mxu0  ;;  %v5568_v37 = vpop.f32.mrf.mxu1 }
 0x25e   :  { %1745 = vxpose.xlu1.b32.end [12/12] (short) (narrow) %v4778_v32, 8  ;;  %1713 = vxpose.xlu0.b32.end [12/12] (short) (narrow) %v4756_v29, 8 }
 0x25f   :  { %v5570_v38 = vpop.f32.mrf.mxu0  ;;  %v5572_v42 = vpop.f32.mrf.mxu1 }
 0x29d   :  { %v4833_v43 = vpop.f32.mrf.mxu0  ;;  %v4859_v12 = vpop.f32.mrf.mxu1 }
 0x29f   :  { %v3630_v44 = vpop.f32.mrf.mxu0  ;;  %v3823_v48 = vpop.f32.mrf.mxu1 }
 0x2a0   :  { %4300 = vxpose.xlu1.b32.start [1/12] (short) (narrow) %v3823_v48, 8  ;;  %4268 = vxpose.xlu0.b32.start [1/12] (short) (narrow) %v3630_v44, 8 }
 0x2a4   :  { %4301 = vxpose.xlu1.b32.cont [2/12] (short) (narrow) %v4859_v12, 8  ;;  %4269 = vxpose.xlu0.b32.cont [2/12] (short) (narrow) %v4833_v43, 8 }
 0x2a7   :  { %v4836_v49 = vpop.f32.mrf.mxu0  ;;  %v4862_v54 = vpop.f32.mrf.mxu1 }
 0x2a9   :  { %v3640_v55 = vpop.f32.mrf.mxu0  ;;  %v3833_v59 = vpop.f32.mrf.mxu1 }
 0x2aa   :  { %4302 = vxpose.xlu1.b32.cont [3/12] (short) (narrow) %v3833_v59, 8  ;;  %4270 = vxpose.xlu0.b32.cont [3/12] (short) (narrow) %v3640_v55, 8 }
 0x2ab   :  { %v4839_v17 = vpop.f32.mrf.mxu0  ;;  %v4865_v21 = vpop.f32.mrf.mxu1 }
 0x2ad   :  { %v3650_v63 = vpop.f32.mrf.mxu0  ;;  %v3843_v11 = vpop.f32.mrf.mxu1 }
 0x2ae   :  { %4303 = vxpose.xlu1.b32.cont [4/12] (short) (narrow) %v4862_v54, 8  ;;  %4271 = vxpose.xlu0.b32.cont [4/12] (short) (narrow) %v4836_v49, 8 }
 0x2af   :  { %v4868_v26 = vpop.f32.mrf.mxu1 }
 0x2b1   :  { %v4842_v20 = vpop.f32.mrf.mxu0  ;;  %v3853_v46 = vpop.f32.mrf.mxu1 }
 0x2b2   :  { %4304 = vxpose.xlu1.b32.cont [5/12] (short) (narrow) %v3843_v11, 8  ;;  %4272 = vxpose.xlu0.b32.cont [5/12] (short) (narrow) %v3650_v63, 8 }
 0x2b3   :  { %v3660_v7 = vpop.f32.mrf.mxu0  ;;  %v4871_v60 = vpop.f32.mrf.mxu1 }
 0x2b5   :  { %v3863_v31 = vpop.f32.mrf.mxu1 }
 0x2b6   :  { %4305 = vxpose.xlu1.b32.cont [6/12] (short) (narrow) %v4865_v21, 8  ;;  %4273 = vxpose.xlu0.b32.cont [6/12] (short) (narrow) %v4839_v17, 8 }
 0x2b7   :  { %v4874_v58 = vpop.f32.mrf.mxu1 }
 0x2b9   :  { %v4845_v14 = vpop.f32.mrf.mxu0  ;;  %v3873_v40 = vpop.f32.mrf.mxu1 }
 0x2ba   :  { %4306 = vxpose.xlu1.b32.cont [7/12] (short) (narrow) %v3853_v46, 8  ;;  %4274 = vxpose.xlu0.b32.cont [7/12] (short) (narrow) %v3660_v7, 8 }
 0x2bb   :  { %v3670_v0 = vpop.f32.mrf.mxu0  ;;  %v4911_v51 = vpop.f32.mrf.mxu1 }
 0x2bd   :  { %v4209_v57 = vpop.f32.mrf.mxu1 }
 0x2be   :  { %4307 = vxpose.xlu1.b32.cont [8/12] (short) (narrow) %v4868_v26, 8  ;;  %4275 = vxpose.xlu0.b32.cont [8/12] (short) (narrow) %v4842_v20, 8 }
 0x2c1   :  { %v4848_v53 = vpop.f32.mrf.mxu0 }
 0x2c2   :  { %4308 = vxpose.xlu1.b32.cont [9/12] (short) (narrow) %v3863_v31, 8  ;;  %4276 = vxpose.xlu0.b32.cont [9/12] (short) (narrow) %v3670_v0, 8 }
 0x2c3   :  { %v3680_v33 = vpop.f32.mrf.mxu0  ;;  %v4914_v4 = vpop.f32.mrf.mxu1 }
 0x2c5   :  { %v4219_v9 = vpop.f32.mrf.mxu1 }
 0x2c6   :  { %4309 = vxpose.xlu1.b32.cont [10/12] (short) (narrow) %v4871_v60, 8  ;;  %4277 = vxpose.xlu0.b32.cont [10/12] (short) (narrow) %v4845_v14, 8 }
 0x2c9   :  { %v4885_v45 = vpop.f32.mrf.mxu0 }
 0x2ca   :  { %4310 = vxpose.xlu1.b32.cont [11/12] (short) (narrow) %v3873_v40, 8  ;;  %4278 = vxpose.xlu0.b32.cont [11/12] (short) (narrow) %v3680_v33, 8 }
 0x2cb   :  { %v4016_v52 = vpop.f32.mrf.mxu0  ;;  %v4917_v29 = vpop.f32.mrf.mxu1 }
 0x2cd   :  { %v4229_v41 = vpop.f32.mrf.mxu1 }
 0x2ce   :  { %4311 = vxpose.xlu1.b32.end [12/12] (short) (narrow) %v4874_v58, 8  ;;  %4279 = vxpose.xlu0.b32.end [12/12] (short) (narrow) %v4848_v53, 8 }
 0x2d1   :  { %v4888_v62 = vpop.f32.mrf.mxu0 }
 0x2d2   :  { %4364 = vxpose.xlu1.b32.start [1/12] (short) (narrow) %v4209_v57, 8  ;;  %4332 = vxpose.xlu0.b32.start [1/12] (short) (narrow) %v4016_v52, 8  ;;  %v4952_v57 = vld [vmem:[#allocation5] sm:$0xf] }
 0x2d3   :  { %v4026_v6 = vpop.f32.mrf.mxu0  ;;  %v4920_v43 = vpop.f32.mrf.mxu1 }
 0x2d5   :  { %v4239_v44 = vpop.f32.mrf.mxu1 }
 0x2d6   :  { %4365 = vxpose.xlu1.b32.cont [2/12] (short) (narrow) %v4911_v51, 8  ;;  %4333 = vxpose.xlu0.b32.cont [2/12] (short) (narrow) %v4885_v45, 8 }
 0x2d9   :  { %v4891_v16 = vpop.f32.mrf.mxu0 }
 0x2da   :  { %4366 = vxpose.xlu1.b32.cont [3/12] (short) (narrow) %v4219_v9, 8  ;;  %4334 = vxpose.xlu0.b32.cont [3/12] (short) (narrow) %v4026_v6, 8  ;;  %v4953_v6 = vld [vmem:[#allocation5 + $0x4] sm:$0xf] }
 0x2db   :  { %v4036_v32 = vpop.f32.mrf.mxu0  ;;  %v4923_v49 = vpop.f32.mrf.mxu1 }
 0x2dd   :  { %v4249_v55 = vpop.f32.mrf.mxu1 }
 0x2de   :  { %4367 = vxpose.xlu1.b32.cont [4/12] (short) (narrow) %v4914_v4, 8  ;;  %4335 = vxpose.xlu0.b32.cont [4/12] (short) (narrow) %v4888_v62, 8 }
 0x2e1   :  { %v4894_v39 = vpop.f32.mrf.mxu0 }
 0x2e2   :  { %4368 = vxpose.xlu1.b32.cont [5/12] (short) (narrow) %v4229_v41, 8  ;;  %4336 = vxpose.xlu0.b32.cont [5/12] (short) (narrow) %v4036_v32, 8 }
 0x2e3   :  { %v4046_v12 = vpop.f32.mrf.mxu0  ;;  %v4926_v17 = vpop.f32.mrf.mxu1 }
 0x2e5   :  { %v4259_v63 = vpop.f32.mrf.mxu1 }
 0x2e6   :  { %4369 = vxpose.xlu1.b32.cont [6/12] (short) (narrow) %v4917_v29, 8  ;;  %4337 = vxpose.xlu0.b32.cont [6/12] (short) (narrow) %v4891_v16, 8 }
 0x2e9   :  { %v4897_v48 = vpop.f32.mrf.mxu0 }
 0x2ea   :  { %4370 = vxpose.xlu1.b32.cont [7/12] (short) (narrow) %v4239_v44, 8  ;;  %4338 = vxpose.xlu0.b32.cont [7/12] (short) (narrow) %v4046_v12, 8 }
 0x2eb   :  { %v4056_v54 = vpop.f32.mrf.mxu0 }
 0x2ee   :  { %4371 = vxpose.xlu1.b32.cont [8/12] (short) (narrow) %v4920_v43, 8  ;;  %4339 = vxpose.xlu0.b32.cont [8/12] (short) (narrow) %v4894_v39, 8 }
 0x2f1   :  { %v4900_v59 = vpop.f32.mrf.mxu0 }
 0x2f2   :  { %4372 = vxpose.xlu1.b32.cont [9/12] (short) (narrow) %v4249_v55, 8  ;;  %4340 = vxpose.xlu0.b32.cont [9/12] (short) (narrow) %v4056_v54, 8 }
 0x2f3   :  { %v4066_v21 = vpop.f32.mrf.mxu0 }
 0x2f6   :  { %4373 = vxpose.xlu1.b32.cont [10/12] (short) (narrow) %v4923_v49, 8  ;;  %4341 = vxpose.xlu0.b32.cont [10/12] (short) (narrow) %v4897_v48, 8 }
 0x2fa   :  { %4374 = vxpose.xlu1.b32.cont [11/12] (short) (narrow) %v4259_v63, 8  ;;  %4342 = vxpose.xlu0.b32.cont [11/12] (short) (narrow) %v4066_v21, 8 }
 0x2fe   :  { %4375 = vxpose.xlu1.b32.end [12/12] (short) (narrow) %v4926_v17, 8  ;;  %4343 = vxpose.xlu0.b32.end [12/12] (short) (narrow) %v4900_v59, 8 }
 0x302   :  { %1798 = vxpose.xlu1.b32.start [1/12] (short) (narrow) %v5532_v34, 8  ;;  %1766 = vxpose.xlu0.b32.start [1/12] (short) (narrow) %v5530_v25, 8 }
 0x306   :  { %1799 = vxpose.xlu1.b32.cont [2/12] (short) (narrow) %v5528_v50, 8  ;;  %1767 = vxpose.xlu0.b32.cont [2/12] (short) (narrow) %v5526_v22, 8  ;;  %v1750_v22 = vpop.trf.xlu1  ;;  %v1718_v50 = vpop.trf.xlu0 }
 0x30a   :  { %1800 = vxpose.xlu1.b32.cont [3/12] (short) (narrow) %v5540_v1, 8  ;;  %1768 = vxpose.xlu0.b32.cont [3/12] (short) (narrow) %v5538_v61, 8 }
 0x30e   :  { %1801 = vxpose.xlu1.b32.cont [4/12] (short) (narrow) %v5536_v56, 8  ;;  %1769 = vxpose.xlu0.b32.cont [4/12] (short) (narrow) %v5534_v47, 8 }
 0x312   :  { %1802 = vxpose.xlu1.b32.cont [5/12] (short) (narrow) %v5548_v8, 8  ;;  %1770 = vxpose.xlu0.b32.cont [5/12] (short) (narrow) %v5546_v5, 8 }
 0x316   :  { %1803 = vxpose.xlu1.b32.cont [6/12] (short) (narrow) %v5544_v3, 8  ;;  %1771 = vxpose.xlu0.b32.cont [6/12] (short) (narrow) %v5542_v2, 8 }
 0x31a   :  { %1804 = vxpose.xlu1.b32.cont [7/12] (short) (narrow) %v5556_v15, 8  ;;  %1772 = vxpose.xlu0.b32.cont [7/12] (short) (narrow) %v5554_v13, 8 }
 0x31e   :  { %1805 = vxpose.xlu1.b32.cont [8/12] (short) (narrow) %v5552_v10, 8  ;;  %1773 = vxpose.xlu0.b32.cont [8/12] (short) (narrow) %v5550_v18, 8  ;;  %v4316_v25 = vpop.trf.xlu1  ;;  %v4284_v34 = vpop.trf.xlu0 }
 0x322   :  { %1806 = vxpose.xlu1.b32.cont [9/12] (short) (narrow) %v5564_v35, 8  ;;  %1774 = vxpose.xlu0.b32.cont [9/12] (short) (narrow) %v5562_v30, 8 }
 0x326   :  { %1807 = vxpose.xlu1.b32.cont [10/12] (short) (narrow) %v5560_v28, 8  ;;  %1775 = vxpose.xlu0.b32.cont [10/12] (short) (narrow) %v5558_v23, 8 }
 0x32a   :  { %1808 = vxpose.xlu1.b32.cont [11/12] (short) (narrow) %v5572_v42, 8  ;;  %1776 = vxpose.xlu0.b32.cont [11/12] (short) (narrow) %v5570_v38, 8 }
 0x32e   :  { %1809 = vxpose.xlu1.b32.end [12/12] (short) (narrow) %v5568_v37, 8  ;;  %1777 = vxpose.xlu0.b32.end [12/12] (short) (narrow) %v5566_v36, 8 }
 0x34e   :  { %v4380_v47 = vpop.trf.xlu1  ;;  %v4348_v56 = vpop.trf.xlu0 }
 0x34f   :  { %v4404_v61 = vcombine.low %v4316_v25, %v4380_v47  ;;  %v4396_v1 = vcombine.low %v4284_v34, %v4348_v56 }
 0x351   :  { %v4411_v2 = vrot.slane %v4404_v61, %v5122_v19  ;;  %v4403_v3 = vrot.slane %v4396_v1, %v5122_v19 }
 0x353   :  { %v4412_v5 = vcombine.low %v4403_v3, %v4411_v2 }
 0x355   :  { %v4419_v8 = vrot.slane %v4412_v5, %v5129_v27 }
 0x357   :  { %4437 = vrot.lane.b32.xlu0 %v4419_v8, %s5064_s20  ;;  %v4420_v18 = vcombine.high %v4419_v8, %v5072_v24 }
 0x359   :  { %4439 = vrot.lane.b32.xlu1 %v4420_v18, %s5064_s20 }
 0x37e   :  { %v1814_v10 = vpop.trf.xlu1  ;;  %v1782_v13 = vpop.trf.xlu0 }
 0x37f   :  { %v1838_v15 = vcombine.low %v1750_v22, %v1814_v10  ;;  %v1830_v23 = vcombine.low %v1718_v50, %v1782_v13 }
 0x381   :  { %v1845_v28 = vrot.slane %v1838_v15, %v5122_v19  ;;  %v1837_v30 = vrot.slane %v1830_v23, %v5122_v19 }
 0x383   :  { %v1846_v35 = vcombine.low %v1837_v30, %v1845_v28 }
 0x385   :  { %v1853_v36 = vrot.slane %v1846_v35, %v5129_v27 }
 0x387   :  { %v1854_v37 = vcombine.high %v1853_v36, %v5072_v24  ;;  %v4421_v38 = vadd.f32 %v4419_v8, %v1853_v36 }
 0x389   :  { %v4422_v42 = vadd.f32 %v4420_v18, %v1854_v37  ;;  %v4613_v11 = vmul.f32 -1.442695, %v4421_v38 }
 0x38b   :  { %4940 = vpow2.f32 %v4613_v11  ;;  %v4614_v20 = vmul.f32 -1.442695, %v4422_v42 }
 0x38d   :  { %4942 = vpow2.f32 %v4614_v20 }
 0x398   :  { %v4941_v26 = vpop.eup %4940 }
 0x399   :  { %v4429_v7 = vadd.f32 1.0, %v4941_v26 }
 0x39a   :  { %v4943_v46 = vpop.eup %4942 }
 0x39b   :  { %4944 = vrcp.f32 %v4429_v7  ;;  %v4430_v14 = vadd.f32 1.0, %v4943_v46 }
 0x39d   :  { %4946 = vrcp.f32 %v4430_v14 }
 0x3a8   :  { %v4945_v60 = vpop.eup %4944 }
 0x3aa   :  { %v4947_v27 = vpop.eup %4946 }
 0x3c9   :  { %v4438_v0 = vpop.permute.xlu0 %4437 }
 0x3ca   :  { %v4443_v19 = vmul.f32 %v4945_v60, %v4438_v0 }
 0x3cb   :  { %v4440_v31 = vpop.permute.xlu1 %4439 }
 0x3cc   :  { %4447 = vrot.lane.b32.xlu1 %v4443_v19, %s5064_s20  ;;  %v4444_v24 = vmul.f32 %v4947_v27, %v4440_v31 }
 0x3d0   :  { %4449 = vrot.lane.b32.xlu1 %v4444_v24, %s5064_s20 }
 0x43e   :  { %v4448_v53 = vpop.permute.xlu1 %4447 }
 0x43f   :  { %v4453_v58 = vadd.f32 %v4448_v53, %v1853_v36 }
 0x441   :  { %4948 = vtanh.f32 %v4453_v58 }
 0x442   :  { %v4450_v33 = vpop.permute.xlu1 %4449 }
 0x443   :  { %v4454_v40 = vadd.f32 %v4450_v33, %v1854_v37 }
 0x445   :  { %4950 = vtanh.f32 %v4454_v40 }
 0x44e   :  { %v4949_v45 = vpop.eup %4948 }
 0x44f   :  { %4459 = vrot.lane.b32.xlu1 %v4949_v45, %s5064_s20 }
 0x452   :  { %v4951_v51 = vpop.eup %4950 }
 0x453   :  { %4461 = vrot.lane.b32.xlu0 %v4951_v51, %s5064_s20 }
 0x4c1   :  { %v4460_v52 = vpop.permute.xlu1 %4459 }
 0x4c2   :  { %v4465_v62 = vsub.f32 %v4952_v57, %v4460_v52 }
 0x4c4   :  { %4469 = vrot.lane.b32.xlu1 %v4465_v62, %s5073_s2 }
 0x4c5   :  { %v4462_v4 = vpop.permute.xlu0 %4461 }
 0x4c6   :  { %v4466_v9 = vsub.f32 %v4953_v6, %v4462_v4 }
 0x4c8   :  { %4471 = vrot.lane.b32.xlu0 %v4466_v9, %s5073_s2 }
 0x536   :  { %v4470_v16 = vpop.permute.xlu1 %4469 }
 0x537   :  { %v4475_v29 = vmul.f32 %v4945_v60, %v4470_v16 }
 0x539   :  { %4479 = vrot.lane.b32.xlu1 %v4475_v29, %s5073_s2 }
 0x53a   :  { %v4472_v32 = vpop.permute.xlu0 %4471 }
 0x53b   :  { %v4476_v41 = vmul.f32 %v4947_v27, %v4472_v32 }
 0x53d   :  { %4481 = vrot.lane.b32.xlu0 %v4476_v41, %s5073_s2 }
 0x5ab   :  { %v4480_v39 = vpop.permute.xlu1 %4479 }
 0x5ac   :  { %v4485_v43 = vadd.f32 %v4949_v45, %v4480_v39 }
 0x5ae   :  { %4489 = vrot.lane.b32.xlu1 %v4485_v43, %s5064_s20 }
 0x5af   :  { %v4482_v12 = vpop.permute.xlu0 %4481 }
 0x5b0   :  { %v4486_v44 = vadd.f32 %v4951_v51, %v4482_v12 }
 0x5b2   :  { %4491 = vrot.lane.b32.xlu0 %v4486_v44, %s5064_s20 }
 0x620   :  { %v4490_v48 = vpop.permute.xlu1 %4489 }
 0x621   :  { %4496 = vst.msk [vmem:[#allocation10] sm:$0xf] %vm4495_vm2, %v4490_v48 }
 0x624   :  { %v4492_v49 = vpop.permute.xlu0 %4491 }
 0x625   :  { %4497 = vst.msk [vmem:[#allocation10 + $0x4] sm:$0xf] %vm4495_vm2, %v4492_v49 }
 0x626   :  { %5045 = shalt.err (!%p5042_p10)
}
 0x627   :  { %4509 = dma.vmem_to_hbm [thread:$0]  %s4504_s11, 128, %s5624_s4, [#allocation4], %s5064_s20, %s5064_s20, %s5065_s21  }
 0x628   :  { %5060 = dma.done.wait [#allocation4], 128  }
 0x629   :  { %5061 = vsyncadd [#allocation4], 4294967168 }
 0x62a   :  { %4513 = vsyncpa [#allocation3], 1 }
 0x62b   :  { %4514 = vsyncpa [#allocation6], 1 }
 0x62c   :  { %4515 = vsyncpa [#allocation9], 1 }
 0x62d   :  { %4516 = vsyncpa [#allocation4], 1 }

</bundles_post_ra>
